<compile_context>
chip_gen: v6e
topology: v6e:2x2x1
jax: 0.10.0
libtpu: 0.0.40
codegen_flags: <defaults>
</compile_context>

<pallas_src>
import jax
import jax.numpy as jnp
import numpy as np
from jax.experimental import pallas as pl
from jax.experimental.pallas import tpu as pltpu

# ----------------------------- synthetic config ------------------------------
NUM_CLASSES = 32      # num_obj_classes
EMBED_DIM   = 32      # MODEL.ROI_RELATION_HEAD.EMBED_DIM
OBJ_DIM     = 128     # in_channels
HIDDEN_DIM  = 64      # CONTEXT_HIDDEN_DIM
POOL_DIM    = 128     # CONTEXT_POOLING_DIM (== in_channels -> no rel up-dim fc)
GEO_DIM     = 128     # geometry_feat_dim (fixed at 128 in the module)
BN_EPS      = 1e-5
PACK_DIM    = 128     # [logits(32) | emb_label(32) | geo16(16) | zeros(48)]

_CPARAMS = pltpu.CompilerParams(
    dimension_semantics=("parallel",),          # row grid -> megacore/2-TC sharding
    vmem_limit_bytes=32 * 1024 * 1024)          # safe on v5e/v6e and v7x (64 MiB phys)


def _choose_tm(n, cap=1024):
    # >= 2 grid steps when possible (so v7x's two TensorCores both run), rows a
    # multiple of 32 (sublane friendly), capped so double-buffered tiles stay tiny.
    half = -(-n // 2)
    tm = ((half + 31) // 32) * 32
    return int(max(32, min(cap, tm)))


# ================================ Pallas kernels ==============================
def _obj_fused_kernel(packed_ref, roi_ref,
                      w1_ref, w2_ref, wl_ref, we_ref, wr_ref, wp_ref, bias_ref,
                      fused_ref, obj_ref):
    """Fused object path over one row tile.

    packed = [logits | emb_label | geo16 | 0]  (bf16, 128 lanes)
    pos    = relu(geo16 @ w1_eff @ pos_w2 + b2)       (BN + fc1 bias folded in w1_eff)
    big    = lbl@Wl + (exp_num@We)*inv_softmax + roi@Wr + pos@Wp + bias
             where Wl/We/Wr/Wp already absorb obj_hidden_linear (no nonlinearity
             between `hid` and the updim/finalize matmuls) and the embed projection.
    fused  = big[:, :2H]   (bf16 head|tail reps)
    obj    = relu(big[:, 2H:])
    """
    f32, bf16 = jnp.float32, jnp.bfloat16
    H = HIDDEN_DIM

    packed = packed_ref[...]                                      # (TM, 128) bf16
    logits = packed[:, :NUM_CLASSES].astype(f32)
    lbl = packed[:, NUM_CLASSES:NUM_CLASSES + EMBED_DIM]          # bf16
    geo = packed[:, 64:64 + 16].astype(f32)

    # softmax numerator + per-row 1/denominator (EUP, effectively free)
    e = jnp.exp(logits - jnp.max(logits, axis=-1, keepdims=True))
    inv = pl.reciprocal(jnp.sum(e, axis=-1, keepdims=True), approx=True)

    # pos_embed MLP: fc(9->32)+BN folded into w1_eff (f32, tiny), fc(32->128), ReLU
    bn = jnp.dot(geo, w1_ref[...], preferred_element_type=f32)    # (TM, 32)
    pos = jnp.maximum(
        jnp.dot(bn, w2_ref[...], preferred_element_type=f32)
        + bias_ref[0:1, :GEO_DIM], 0.0)                           # (TM, 128)

    roi = roi_ref[...]                                            # f32 stream
    big = (jnp.dot(lbl, wl_ref[...], preferred_element_type=f32)
           + jnp.dot(e.astype(bf16), we_ref[...], preferred_element_type=f32) * inv
           + jnp.dot(roi.astype(bf16), wr_ref[...], preferred_element_type=f32)
           + jnp.dot(pos.astype(bf16), wp_ref[...], preferred_element_type=f32)
           + bias_ref[1:2, :])                                    # (TM, 2H + P)

    fused_ref[...] = big[:, :2 * H].astype(bf16)                  # 128-lane bf16 store
    obj_ref[...] = jnp.maximum(big[:, 2 * H:], 0.0)               # 128-lane f32 store


def _rel_fused_kernel(pair_ref, geo_ref, union_ref,
                      w1_ref, w2_ref, wf_ref, bias_ref, o_ref):
    """spt_emb MLP * pair feats -> pairwise_rel_feat_finalize_fc -> + union."""
    f32, bf16 = jnp.float32, jnp.bfloat16
    H = HIDDEN_DIM
    s1 = jnp.maximum(
        jnp.dot(geo_ref[...], w1_ref[...], preferred_element_type=f32)
        + bias_ref[0:1, :H], 0.0)                                 # (TM, 64)
    spt = jnp.maximum(
        jnp.dot(s1.astype(bf16), w2_ref[...], preferred_element_type=f32)
        + bias_ref[1:2, :], 0.0)                                  # (TM, 128)
    # f32 elementwise (v5e VPU has no bf16); pair stream is bf16 from the obj kernel
    x = pair_ref[...].astype(f32) * spt
    rel = jnp.maximum(
        jnp.dot(x.astype(bf16), wf_ref[...], preferred_element_type=f32)
        + bias_ref[2:3, :], 0.0)
    o_ref[...] = union_ref[...] + rel                             # 128-lane f32 store


# ============================== pallas_call wrappers ==========================
def _row_spec(tm, d):
    return pl.BlockSpec((tm, d), lambda i: (i, 0))


def _full_spec(x):
    return pl.BlockSpec(x.shape, lambda i: (0, 0))


def obj_fused_fwd(packed, roi, w1_eff, pos_w2, w_lbl, w_emb, w_roi, w_pos, bias):
    n = roi.shape[0]
    tm = _choose_tm(n)
    consts = [w1_eff, pos_w2, w_lbl, w_emb, w_roi, w_pos, bias]
    flops = 2 * n * (16 * 32 + 32 * 128 + 2 * 32 * 256 + 2 * 128 * 256)
    const_bytes = sum(int(np.prod(c.shape)) * c.dtype.itemsize for c in consts)
    bytes_accessed = n * (2 * PACK_DIM + 4 * OBJ_DIM + 2 * 2 * HIDDEN_DIM
                          + 4 * POOL_DIM) + const_bytes
    fused, obj = pl.pallas_call(
        _obj_fused_kernel,
        out_shape=(jax.ShapeDtypeStruct((n, 2 * HIDDEN_DIM), jnp.bfloat16),
                   jax.ShapeDtypeStruct((n, POOL_DIM), jnp.float32)),
        grid=(pl.cdiv(n, tm),),
        in_specs=[_row_spec(tm, PACK_DIM), _row_spec(tm, OBJ_DIM)]
                 + [_full_spec(c) for c in consts],
        out_specs=(_row_spec(tm, 2 * HIDDEN_DIM), _row_spec(tm, POOL_DIM)),
        compiler_params=_CPARAMS,
        cost_estimate=pl.CostEstimate(flops=flops, transcendentals=33 * n,
                                      bytes_accessed=bytes_accessed),
    )(packed, roi, *consts)
    return fused, obj


def rel_fused_fwd(pair_feat, pair_geo, union, spt_w1, spt_w2, w_fin_rel, bias):
    n = pair_feat.shape[0]
    tm = _choose_tm(n)
    consts = [spt_w1, spt_w2, w_fin_rel, bias]
    flops = 2 * n * (32 * 64 + 64 * 128 + 128 * 128)
    const_bytes = sum(int(np.prod(c.shape)) * c.dtype.itemsize for c in consts)
    bytes_accessed = n * (2 * 2 * HIDDEN_DIM + 4 * 32 + 4 * POOL_DIM
                          + 4 * POOL_DIM) + const_bytes
    return pl.pallas_call(
        _rel_fused_kernel,
        out_shape=jax.ShapeDtypeStruct((n, POOL_DIM), jnp.float32),
        grid=(pl.cdiv(n, tm),),
        in_specs=[_row_spec(tm, 2 * HIDDEN_DIM), _row_spec(tm, 32),
                  _row_spec(tm, POOL_DIM)] + [_full_spec(c) for c in consts],
        out_specs=_row_spec(tm, POOL_DIM),
        compiler_params=_CPARAMS,
        cost_estimate=pl.CostEstimate(flops=flops, transcendentals=0,
                                      bytes_accessed=bytes_accessed),
    )(pair_feat, pair_geo, union, *consts)


# ================================ JAX glue ====================================
def encode_box_info(boxes, img_w, img_h):
    # 9-dim normalized box geometry (motifs encode_box_info).
    wh = boxes[:, 2:4] - boxes[:, 0:2] + 1.0
    xy = boxes[:, 0:2] + 0.5 * wh
    w, h = wh[:, 0:1], wh[:, 1:2]
    x, y = xy[:, 0:1], xy[:, 1:2]
    x1, y1, x2, y2 = boxes[:, 0:1], boxes[:, 1:2], boxes[:, 2:3], boxes[:, 3:4]
    return jnp.concatenate(
        [w / img_w, h / img_h, x / img_w, y / img_h,
         x1 / img_w, y1 / img_h, x2 / img_w, y2 / img_h,
         w * h / (img_w * img_h)], axis=1)


def get_box_info(boxes, norm_scale=None):
    # [n, (x1,y1,x2,y2,cx,cy,w,h)]
    wh = boxes[:, 2:4] - boxes[:, 0:2] + 1.0
    center = boxes[:, 0:2] + 0.5 * wh
    info = jnp.concatenate([boxes, center, wh], axis=1)
    if norm_scale is not None:
        info = info / norm_scale
    return info


def get_box_pair_info(box1, box2):
    # 32-dim pairwise box geometry (box1, box2, union, intersection).
    ub = jnp.stack([jnp.minimum(box1[:, 0], box2[:, 0]),
                    jnp.minimum(box1[:, 1], box2[:, 1]),
                    jnp.maximum(box1[:, 2], box2[:, 2]),
                    jnp.maximum(box1[:, 3], box2[:, 3])], axis=1)
    union_info = get_box_info(ub)
    ib = jnp.stack([jnp.maximum(box1[:, 0], box2[:, 0]),
                    jnp.maximum(box1[:, 1], box2[:, 1]),
                    jnp.minimum(box1[:, 2], box2[:, 2]),
                    jnp.minimum(box1[:, 3], box2[:, 3])], axis=1)
    inter_info = get_box_info(ib)
    invalid = (ib[:, 2] < ib[:, 0]) | (ib[:, 3] < ib[:, 1])
    inter_info = jnp.where(invalid[:, None], 0.0, inter_info)
    return jnp.concatenate([box1, box2, union_info, inter_info], axis=1)


def pairwise_feature_extractor_forward(params, inst_roi_feats, union_features,
                                       boxes_list, img_sizes, predict_logits,
                                       pred_labels, rel_pair_idxs, num_objs):
    p = params
    f32, bf16 = jnp.float32, jnp.bfloat16
    D, E, H, P, G = OBJ_DIM, EMBED_DIM, HIDDEN_DIM, POOL_DIM, GEO_DIM
    n_obj = inst_roi_feats.shape[0]

    # ---- wrapper-side layout plumbing (freshly-materialized operands -> bf16) ----
    emb_label = jnp.take(p["w_embed_label"], pred_labels, axis=0)            # (n, 32)
    geo9 = jnp.concatenate(
        [encode_box_info(b, float(w), float(h))
         for b, (w, h) in zip(boxes_list, img_sizes)], axis=0)
    # pad 9 geometry dims to 16; column 9 is a constant 1 carrying fc1's bias
    geo16 = jnp.concatenate(
        [geo9, jnp.ones((n_obj, 1), f32), jnp.zeros((n_obj, 6), f32)], axis=1)
    # single lane-dense packed stream: [logits | emb_label | geo16 | 0]
    packed = jnp.concatenate(
        [predict_logits.astype(bf16), emb_label.astype(bf16),
         geo16.astype(bf16), jnp.zeros((n_obj, PACK_DIM - 80), bf16)], axis=1)

    # fold eval-mode BatchNorm1d (+ fc1 bias) into the first pos_embed weight (f32)
    scale = p["bn_gamma"] / jnp.sqrt(p["bn_var"] + BN_EPS)
    shift = p["bn_beta"] - p["bn_mean"] * scale
    w1_eff = (jnp.zeros((16, 32), f32)
              .at[:9, :].set(p["pos_w1"] * scale[None, :])
              .at[9, :].set(p["pos_b1"] * scale + shift))
    # TODO(synk): BatchNorm1d is evaluated in inference mode with running stats,
    # not training-time batch statistics.

    # fold obj_hidden_linear + the embed projection into the single 256-wide matmul
    Wb = jnp.concatenate([p["w_updim"], p["w_fin_obj"]], axis=1)     # (E+D+H, 2H+P)
    Wb_lbl, Wb_roi, Wb_hid = Wb[:E], Wb[E:E + D], Wb[E + D:]
    Whid_roi, Whid_emb, Whid_pos = (p["w_hid"][:D], p["w_hid"][D:D + E],
                                    p["w_hid"][D + E:])
    w_lbl = Wb_lbl                                                   # (32, 256)
    w_roi = Wb_roi + Whid_roi @ Wb_hid                               # (128, 256)
    w_pos = Whid_pos @ Wb_hid                                        # (128, 256)
    w_emb = p["w_embed_prob"] @ (Whid_emb @ Wb_hid)                  # (32, 256)
    b_big = p["b_hid"] @ Wb_hid + jnp.concatenate([p["b_updim"], p["b_fin_obj"]])

    bias_obj = (jnp.zeros((8, 2 * H + P), f32)
                .at[0, :G].set(p["pos_b2"])
                .at[1, :].set(b_big))

    fused, augment_obj_feat_out = obj_fused_fwd(
        packed, inst_roi_feats, w1_eff, p["pos_w2"],
        w_lbl.astype(bf16), w_emb.astype(bf16),
        w_roi.astype(bf16), w_pos.astype(bf16), bias_obj)            # Pallas

    # ---- vectorized pair gathers + pairwise box geometry (batched glue) ---------
    offsets = np.concatenate([[0], np.cumsum(num_objs)[:-1]]).astype(np.int32)
    idx = jnp.concatenate(
        [jnp.asarray(pidx, jnp.int32) + jnp.int32(off)
         for pidx, off in zip(rel_pair_idxs, offsets)], axis=0)      # (n_rel, 2)
    head = jnp.take(fused[:, :H], idx[:, 0], axis=0)
    tail = jnp.take(fused[:, H:], idx[:, 1], axis=0)
    pair_feat = jnp.concatenate([head, tail], axis=1)                # (n_rel, 2H) bf16

    boxes_all = jnp.concatenate(boxes_list, axis=0)
    norms = np.concatenate(
        [np.full((n,), max(max(w, h), 100.0), np.float32)
         for n, (w, h) in zip(num_objs, img_sizes)])
    obox_all = get_box_info(boxes_all) / jnp.asarray(norms)[:, None]
    pair_geo = get_box_pair_info(jnp.take(obox_all, idx[:, 0], axis=0),
                                 jnp.take(obox_all, idx[:, 1], axis=0))

    bias_rel = (jnp.zeros((8, P), f32)
                .at[0, :H].set(p["spt_b1"])
                .at[1, :2 * H].set(p["spt_b2"])
                .at[2, :].set(p["b_fin_rel"]))

    # rel_feat_dim_not_match is False (pooling_dim == in_channels) -> no up-dim fc
    rel_features = rel_fused_fwd(
        pair_feat, pair_geo, union_features,
        p["spt_w1"], p["spt_w2"].astype(bf16), p["w_fin_rel"].astype(bf16),
        bias_rel)                                                    # Pallas

    return augment_obj_feat_out, rel_features


# ============================ pure-JAX reference ==============================
def reference_forward(params, roi, union, boxes_list, img_sizes, logits,
                      pred_labels, rel_pair_idxs, num_objs):
    p = params
    emb_dist = jax.nn.softmax(logits, axis=1) @ p["w_embed_prob"]
    emb_label = p["w_embed_label"][pred_labels]
    geo9 = jnp.concatenate(
        [encode_box_info(b, float(w), float(h))
         for b, (w, h) in zip(boxes_list, img_sizes)], axis=0)
    hg = geo9 @ p["pos_w1"] + p["pos_b1"]
    hg = (hg - p["bn_mean"]) / jnp.sqrt(p["bn_var"] + BN_EPS) * p["bn_gamma"] + p["bn_beta"]
    pos = jax.nn.relu(hg @ p["pos_w2"] + p["pos_b2"])
    obj_pre = jnp.concatenate([roi, emb_dist, pos], axis=-1)
    hid = obj_pre @ p["w_hid"] + p["b_hid"]
    aug = jnp.concatenate([emb_label, roi, hid], axis=-1)
    fused = aug @ p["w_updim"] + p["b_updim"]
    head_rep, tail_rep = fused[:, :HIDDEN_DIM], fused[:, HIDDEN_DIM:]

    pair_feat, pair_geo = [], []
    offset = 0
    for pidx, n, boxes, (w, h) in zip(rel_pair_idxs, num_objs, boxes_list, img_sizes):
        norm = float(max(max(w, h), 100))
        obox = get_box_info(boxes, norm_scale=norm)
        pair_feat.append(jnp.concatenate(
            [head_rep[offset:offset + n][pidx[:, 0]],
             tail_rep[offset:offset + n][pidx[:, 1]]], axis=-1))
        pair_geo.append(get_box_pair_info(obox[pidx[:, 0]], obox[pidx[:, 1]]))
        offset += n
    pair_feat = jnp.concatenate(pair_feat, axis=0)
    pair_geo = jnp.concatenate(pair_geo, axis=0)

    spt = jax.nn.relu(jax.nn.relu(pair_geo @ p["spt_w1"] + p["spt_b1"])
                      @ p["spt_w2"] + p["spt_b2"])
    rel = jax.nn.relu((pair_feat * spt) @ p["w_fin_rel"] + p["b_fin_rel"])
    rel_features = union + rel
    obj_out = jax.nn.relu(aug @ p["w_fin_obj"] + p["b_fin_obj"])
    return obj_out, rel_features


# ================================== main ======================================
def _init_params(key):
    def dense(k, fan_in, fan_out):
        kw, kb = jax.random.split(k)
        w = jax.random.normal(kw, (fan_in, fan_out), jnp.float32) / np.sqrt(fan_in)
        b = 0.01 * jax.random.normal(kb, (fan_out,), jnp.float32)
        return w, b

    ks = jax.random.split(key, 14)
    D, E, H, P, C = OBJ_DIM, EMBED_DIM, HIDDEN_DIM, POOL_DIM, NUM_CLASSES
    p = {}
    p["w_embed_prob"] = jax.random.normal(ks[0], (C, E), jnp.float32) * 0.1
    p["w_embed_label"] = p["w_embed_prob"]  # module copies the same GloVe vectors
    p["pos_w1"], p["pos_b1"] = dense(ks[1], 9, 32)
    p["pos_w2"], p["pos_b2"] = dense(ks[2], 32, GEO_DIM)
    p["bn_gamma"] = 1.0 + 0.2 * jax.random.normal(ks[9], (32,), jnp.float32)
    p["bn_beta"] = 0.1 * jax.random.normal(ks[10], (32,), jnp.float32)
    p["bn_mean"] = 0.1 * jax.random.normal(ks[11], (32,), jnp.float32)
    p["bn_var"] = 0.5 + jax.random.uniform(ks[12], (32,), jnp.float32)
    p["w_hid"], p["b_hid"] = dense(ks[3], D + E + GEO_DIM, H)
    p["w_updim"], p["b_updim"] = dense(ks[4], E + D + H, 2 * H)
    p["w_fin_obj"], p["b_fin_obj"] = dense(ks[5], E + D + H, P)
    p["spt_w1"], p["spt_b1"] = dense(ks[6], 32, H)
    p["spt_w2"], p["spt_b2"] = dense(ks[7], H, 2 * H)
    p["w_fin_rel"], p["b_fin_rel"] = dense(ks[8], 2 * H, P)
    return p


if __name__ == "__main__":
    key = jax.random.PRNGKey(0)
    k_par, k_roi, k_uni, k_log, k_lbl, k_box, k_pair = jax.random.split(key, 7)

    num_images = 2
    objs_per_img = 48
    rels_per_img = 128
    num_objs = [objs_per_img] * num_images
    n_obj = sum(num_objs)
    n_rel = rels_per_img * num_images
    img_sizes = [(640.0, 480.0), (600.0, 400.0)]   # (width, height)

    params = _init_params(k_par)

    inst_roi_feats = jax.random.normal(k_roi, (n_obj, OBJ_DIM), jnp.float32)
    union_features = jax.random.normal(k_uni, (n_rel, POOL_DIM), jnp.float32)
    predict_logits = jax.random.normal(k_log, (n_obj, NUM_CLASSES), jnp.float32)
    pred_labels = jax.random.randint(k_lbl, (n_obj,), 0, NUM_CLASSES)

    boxes_list = []
    for kb, (w, h) in zip(jax.random.split(k_box, num_images), img_sizes):
        k1, k2, k3, k4 = jax.random.split(kb, 4)
        x1 = jax.random.uniform(k1, (objs_per_img, 1), minval=0.0, maxval=0.6 * w)
        y1 = jax.random.uniform(k2, (objs_per_img, 1), minval=0.0, maxval=0.6 * h)
        bw = jax.random.uniform(k3, (objs_per_img, 1), minval=4.0, maxval=0.4 * w)
        bh = jax.random.uniform(k4, (objs_per_img, 1), minval=4.0, maxval=0.4 * h)
        boxes_list.append(jnp.concatenate([x1, y1, x1 + bw, y1 + bh], axis=1))

    rel_pair_idxs = [
        jax.random.randint(kp, (rels_per_img, 2), 0, objs_per_img)
        for kp in jax.random.split(k_pair, num_images)
    ]

    obj_feat, rel_feat = pairwise_feature_extractor_forward(
        params, inst_roi_feats, union_features, boxes_list, img_sizes,
        predict_logits, pred_labels, rel_pair_idxs, num_objs)
    obj_feat = jax.block_until_ready(obj_feat)
    rel_feat = jax.block_until_ready(rel_feat)

    ref_obj, ref_rel = reference_forward(
        params, inst_roi_feats, union_features, boxes_list, img_sizes,
        predict_logits, pred_labels, rel_pair_idxs, num_objs)

    assert obj_feat.shape == (n_obj, POOL_DIM) and rel_feat.shape == (n_rel, POOL_DIM)
    assert bool(jnp.all(jnp.isfinite(obj_feat))) and bool(jnp.all(jnp.isfinite(rel_feat)))
    # tolerance covers bf16 MXU operands / bf16 fused reps (f32 accumulation)
    np.testing.assert_allclose(np.asarray(obj_feat), np.asarray(ref_obj),
                               rtol=5e-2, atol=7e-2)
    np.testing.assert_allclose(np.asarray(rel_feat), np.asarray(ref_rel),
                               rtol=5e-2, atol=7e-2)
    print("KERNEL_OK")
</pallas_src>

<mosaic_0001>
module attributes {stable_mosaic.version = 11 : i64} {
  func.func @_obj_fused_kernel(%arg0: i32, %arg1: memref<64x128xbf16, #tpu.memory_space<vmem>>, %arg2: memref<64x128xf32, #tpu.memory_space<vmem>>, %arg3: memref<16x32xf32, #tpu.memory_space<vmem>>, %arg4: memref<32x128xf32, #tpu.memory_space<vmem>>, %arg5: memref<32x256xbf16, #tpu.memory_space<vmem>>, %arg6: memref<32x256xbf16, #tpu.memory_space<vmem>>, %arg7: memref<128x256xbf16, #tpu.memory_space<vmem>>, %arg8: memref<128x256xbf16, #tpu.memory_space<vmem>>, %arg9: memref<8x256xf32, #tpu.memory_space<vmem>>, %arg10: memref<64x128xbf16, #tpu.memory_space<vmem>>, %arg11: memref<64x128xf32, #tpu.memory_space<vmem>>) attributes {dimension_semantics = [#tpu.dimension_semantics<parallel>], iteration_bounds = array<i64: 2>, scalar_prefetch = 0 : i64, scratch_operands = 0 : i64, tpu.core_type = #tpu.core_type<tc>, window_params = [{transform_indices = @transform_0, window_bounds = array<i64: 64, 128>}, {transform_indices = @transform_1, window_bounds = array<i64: 64, 128>}, {pipeline_mode = #tpu.pipeline_mode<synchronous>, transform_indices = @transform_2, window_bounds = array<i64: 16, 32>}, {pipeline_mode = #tpu.pipeline_mode<synchronous>, transform_indices = @transform_3, window_bounds = array<i64: 32, 128>}, {pipeline_mode = #tpu.pipeline_mode<synchronous>, transform_indices = @transform_4, window_bounds = array<i64: 32, 256>}, {pipeline_mode = #tpu.pipeline_mode<synchronous>, transform_indices = @transform_5, window_bounds = array<i64: 32, 256>}, {pipeline_mode = #tpu.pipeline_mode<synchronous>, transform_indices = @transform_6, window_bounds = array<i64: 128, 256>}, {pipeline_mode = #tpu.pipeline_mode<synchronous>, transform_indices = @transform_7, window_bounds = array<i64: 128, 256>}, {pipeline_mode = #tpu.pipeline_mode<synchronous>, transform_indices = @transform_8, window_bounds = array<i64: 8, 256>}, {transform_indices = @transform_9, window_bounds = array<i64: 64, 128>}, {transform_indices = @transform_10, window_bounds = array<i64: 64, 128>}]} {
    %c0 = arith.constant 0 : index
    %c0_0 = arith.constant 0 : index
    %0 = vector.load %arg1[%c0, %c0_0] : memref<64x128xbf16, #tpu.memory_space<vmem>>, vector<64x128xbf16>
    %1 = vector.extract_strided_slice %0 {offsets = [0, 0], sizes = [64, 32], strides = [1, 1]} : vector<64x128xbf16> to vector<64x32xbf16>
    %2 = arith.extf %1 : vector<64x32xbf16> to vector<64x32xf32>
    %3 = vector.extract_strided_slice %0 {offsets = [0, 32], sizes = [64, 32], strides = [1, 1]} : vector<64x128xbf16> to vector<64x32xbf16>
    %4 = vector.extract_strided_slice %0 {offsets = [0, 64], sizes = [64, 16], strides = [1, 1]} : vector<64x128xbf16> to vector<64x16xbf16>
    %5 = arith.extf %4 : vector<64x16xbf16> to vector<64x16xf32>
    %cst = arith.constant dense<0xFF800000> : vector<64xf32>
    %6 = vector.multi_reduction <maximumf>, %2, %cst [1] : vector<64x32xf32> to vector<64xf32>
    %7 = vector.shape_cast %6 : vector<64xf32> to vector<64x1xf32>
    %8 = vector.broadcast %7 : vector<64x1xf32> to vector<64x32xf32>
    %9 = arith.subf %2, %8 : vector<64x32xf32>
    %10 = math.exp %9 : vector<64x32xf32>
    %cst_1 = arith.constant dense<0.000000e+00> : vector<64xf32>
    %11 = vector.multi_reduction <add>, %10, %cst_1 [1] : vector<64x32xf32> to vector<64xf32>
    %12 = vector.shape_cast %11 : vector<64xf32> to vector<64x1xf32>
    %13 = tpu.reciprocal %12 {approx = true} : vector<64x1xf32> -> vector<64x1xf32>
    %c0_2 = arith.constant 0 : index
    %c0_3 = arith.constant 0 : index
    %14 = vector.load %arg3[%c0_2, %c0_3] : memref<16x32xf32, #tpu.memory_space<vmem>>, vector<16x32xf32>
    %cst_4 = arith.constant dense<0.000000e+00> : vector<64x32xf32>
    %15 = tpu.matmul %5, %14, %cst_4 {dimension_numbers = #tpu.dot_dimension_numbers<[1], [0], [0], [1], [0, 0, 1, 1], [], []>} : vector<64x16xf32>, vector<16x32xf32>, vector<64x32xf32> -> vector<64x32xf32>
    %c0_5 = arith.constant 0 : index
    %c0_6 = arith.constant 0 : index
    %16 = vector.load %arg4[%c0_5, %c0_6] : memref<32x128xf32, #tpu.memory_space<vmem>>, vector<32x128xf32>
    %cst_7 = arith.constant dense<0.000000e+00> : vector<64x128xf32>
    %17 = tpu.matmul %15, %16, %cst_7 {dimension_numbers = #tpu.dot_dimension_numbers<[1], [0], [0], [1], [0, 0, 1, 1], [], []>} : vector<64x32xf32>, vector<32x128xf32>, vector<64x128xf32> -> vector<64x128xf32>
    %c0_8 = arith.constant 0 : index
    %c0_9 = arith.constant 0 : index
    %18 = vector.load %arg9[%c0_8, %c0_9] : memref<8x256xf32, #tpu.memory_space<vmem>>, vector<1x128xf32>
    %19 = vector.broadcast %18 : vector<1x128xf32> to vector<64x128xf32>
    %20 = arith.addf %17, %19 : vector<64x128xf32>
    %cst_10 = arith.constant 0.000000e+00 : f32
    %21 = vector.broadcast %cst_10 : f32 to vector<64x128xf32>
    %22 = arith.maximumf %20, %21 : vector<64x128xf32>
    %c0_11 = arith.constant 0 : index
    %c0_12 = arith.constant 0 : index
    %23 = vector.load %arg2[%c0_11, %c0_12] : memref<64x128xf32, #tpu.memory_space<vmem>>, vector<64x128xf32>
    %c0_13 = arith.constant 0 : index
    %c0_14 = arith.constant 0 : index
    %24 = vector.load %arg5[%c0_13, %c0_14] : memref<32x256xbf16, #tpu.memory_space<vmem>>, vector<32x256xbf16>
    %cst_15 = arith.constant dense<0.000000e+00> : vector<64x256xf32>
    %25 = tpu.matmul %3, %24, %cst_15 {dimension_numbers = #tpu.dot_dimension_numbers<[1], [0], [0], [1], [0, 0, 1, 1], [], []>} : vector<64x32xbf16>, vector<32x256xbf16>, vector<64x256xf32> -> vector<64x256xf32>
    %26 = arith.truncf %10 : vector<64x32xf32> to vector<64x32xbf16>
    %c0_16 = arith.constant 0 : index
    %c0_17 = arith.constant 0 : index
    %27 = vector.load %arg6[%c0_16, %c0_17] : memref<32x256xbf16, #tpu.memory_space<vmem>>, vector<32x256xbf16>
    %cst_18 = arith.constant dense<0.000000e+00> : vector<64x256xf32>
    %28 = tpu.matmul %26, %27, %cst_18 {dimension_numbers = #tpu.dot_dimension_numbers<[1], [0], [0], [1], [0, 0, 1, 1], [], []>} : vector<64x32xbf16>, vector<32x256xbf16>, vector<64x256xf32> -> vector<64x256xf32>
    %29 = vector.broadcast %13 : vector<64x1xf32> to vector<64x256xf32>
    %30 = arith.mulf %28, %29 : vector<64x256xf32>
    %31 = arith.addf %25, %30 : vector<64x256xf32>
    %32 = arith.truncf %23 : vector<64x128xf32> to vector<64x128xbf16>
    %c0_19 = arith.constant 0 : index
    %c0_20 = arith.constant 0 : index
    %33 = vector.load %arg7[%c0_19, %c0_20] : memref<128x256xbf16, #tpu.memory_space<vmem>>, vector<128x256xbf16>
    %cst_21 = arith.constant dense<0.000000e+00> : vector<64x256xf32>
    %34 = tpu.matmul %32, %33, %cst_21 {dimension_numbers = #tpu.dot_dimension_numbers<[1], [0], [0], [1], [0, 0, 1, 1], [], []>} : vector<64x128xbf16>, vector<128x256xbf16>, vector<64x256xf32> -> vector<64x256xf32>
    %35 = arith.addf %31, %34 : vector<64x256xf32>
    %36 = arith.truncf %22 : vector<64x128xf32> to vector<64x128xbf16>
    %c0_22 = arith.constant 0 : index
    %c0_23 = arith.constant 0 : index
    %37 = vector.load %arg8[%c0_22, %c0_23] : memref<128x256xbf16, #tpu.memory_space<vmem>>, vector<128x256xbf16>
    %cst_24 = arith.constant dense<0.000000e+00> : vector<64x256xf32>
    %38 = tpu.matmul %36, %37, %cst_24 {dimension_numbers = #tpu.dot_dimension_numbers<[1], [0], [0], [1], [0, 0, 1, 1], [], []>} : vector<64x128xbf16>, vector<128x256xbf16>, vector<64x256xf32> -> vector<64x256xf32>
    %39 = arith.addf %35, %38 : vector<64x256xf32>
    %c1 = arith.constant 1 : index
    %c0_25 = arith.constant 0 : index
    %40 = vector.load %arg9[%c1, %c0_25] : memref<8x256xf32, #tpu.memory_space<vmem>>, vector<1x256xf32>
    %41 = vector.broadcast %40 : vector<1x256xf32> to vector<64x256xf32>
    %42 = arith.addf %39, %41 : vector<64x256xf32>
    %43 = vector.extract_strided_slice %42 {offsets = [0, 0], sizes = [64, 128], strides = [1, 1]} : vector<64x256xf32> to vector<64x128xf32>
    %44 = arith.truncf %43 : vector<64x128xf32> to vector<64x128xbf16>
    %c0_26 = arith.constant 0 : index
    %c0_27 = arith.constant 0 : index
    %45 = vector.load %arg10[%c0_26, %c0_27] : memref<64x128xbf16, #tpu.memory_space<vmem>>, vector<64x128xbf16>
    tpu.vector_store %arg10[%c0_26, %c0_27], %44 {strides = array<i32>} : memref<64x128xbf16, #tpu.memory_space<vmem>>, vector<64x128xbf16>,
    %46 = vector.extract_strided_slice %42 {offsets = [0, 128], sizes = [64, 128], strides = [1, 1]} : vector<64x256xf32> to vector<64x128xf32>
    %cst_28 = arith.constant 0.000000e+00 : f32
    %47 = vector.broadcast %cst_28 : f32 to vector<64x128xf32>
    %48 = arith.maximumf %46, %47 : vector<64x128xf32>
    %c0_29 = arith.constant 0 : index
    %c0_30 = arith.constant 0 : index
    %49 = vector.load %arg11[%c0_29, %c0_30] : memref<64x128xf32, #tpu.memory_space<vmem>>, vector<64x128xf32>
    tpu.vector_store %arg11[%c0_29, %c0_30], %48 {strides = array<i32>} : memref<64x128xf32, #tpu.memory_space<vmem>>, vector<64x128xf32>,
    return
  }
  func.func @transform_0(%arg0: i32) -> (i32, i32) {
    %c0_i32 = arith.constant 0 : i32
    %c0_i32_0 = arith.constant 0 : i32
    return %arg0, %c0_i32 : i32, i32
  }
  func.func @transform_1(%arg0: i32) -> (i32, i32) {
    %c0_i32 = arith.constant 0 : i32
    %c0_i32_0 = arith.constant 0 : i32
    return %arg0, %c0_i32 : i32, i32
  }
  func.func @transform_2(%arg0: i32) -> (i32, i32) {
    %c0_i32 = arith.constant 0 : i32
    %c0_i32_0 = arith.constant 0 : i32
    %c0_i32_1 = arith.constant 0 : i32
    return %c0_i32, %c0_i32_0 : i32, i32
  }
  func.func @transform_3(%arg0: i32) -> (i32, i32) {
    %c0_i32 = arith.constant 0 : i32
    %c0_i32_0 = arith.constant 0 : i32
    %c0_i32_1 = arith.constant 0 : i32
    return %c0_i32, %c0_i32_0 : i32, i32
  }
  func.func @transform_4(%arg0: i32) -> (i32, i32) {
    %c0_i32 = arith.constant 0 : i32
    %c0_i32_0 = arith.constant 0 : i32
    %c0_i32_1 = arith.constant 0 : i32
    return %c0_i32, %c0_i32_0 : i32, i32
  }
  func.func @transform_5(%arg0: i32) -> (i32, i32) {
    %c0_i32 = arith.constant 0 : i32
    %c0_i32_0 = arith.constant 0 : i32
    %c0_i32_1 = arith.constant 0 : i32
    return %c0_i32, %c0_i32_0 : i32, i32
  }
  func.func @transform_6(%arg0: i32) -> (i32, i32) {
    %c0_i32 = arith.constant 0 : i32
    %c0_i32_0 = arith.constant 0 : i32
    %c0_i32_1 = arith.constant 0 : i32
    return %c0_i32, %c0_i32_0 : i32, i32
  }
  func.func @transform_7(%arg0: i32) -> (i32, i32) {
    %c0_i32 = arith.constant 0 : i32
    %c0_i32_0 = arith.constant 0 : i32
    %c0_i32_1 = arith.constant 0 : i32
    return %c0_i32, %c0_i32_0 : i32, i32
  }
  func.func @transform_8(%arg0: i32) -> (i32, i32) {
    %c0_i32 = arith.constant 0 : i32
    %c0_i32_0 = arith.constant 0 : i32
    %c0_i32_1 = arith.constant 0 : i32
    return %c0_i32, %c0_i32_0 : i32, i32
  }
  func.func @transform_9(%arg0: i32) -> (i32, i32) {
    %c0_i32 = arith.constant 0 : i32
    %c0_i32_0 = arith.constant 0 : i32
    return %arg0, %c0_i32 : i32, i32
  }
  func.func @transform_10(%arg0: i32) -> (i32, i32) {
    %c0_i32 = arith.constant 0 : i32
    %c0_i32_0 = arith.constant 0 : i32
    return %arg0, %c0_i32 : i32, i32
  }
}

</mosaic_0001>

<bundles_post_ra>
// kernel: tpu_custom_call.1
= control target key start
LH: loop header
LB: loop body
LE: loop exit
PB: predicated region body
PF: predicated region fallthrough
CT: control target
= control target key end

     0   :  { %s3455_s0 = inlined_call_operand.hbm [shape: bf16[96,128], index: 0, kind: input, shape index: {}]   ;;  %s3456_s1 = inlined_call_operand.hbm [shape: f32[96,128], index: 1, kind: input, shape index: {}]   ;;  %s3457_s2 = inlined_call_operand.hbm [shape: f32[16,32], index: 2, kind: input, shape index: {}]   ;;  %s3458_s3 = inlined_call_operand.hbm [shape: f32[32,128], index: 3, kind: input, shape index: {}]   ;;  %s3459_s4 = inlined_call_operand.hbm [shape: bf16[32,256], index: 4, kind: input, shape index: {}]   ;;  %s3460_s5 = inlined_call_operand.hbm [shape: bf16[32,256], index: 5, kind: input, shape index: {}]   ;;  %s3461_s6 = inlined_call_operand.hbm [shape: bf16[128,256], index: 6, kind: input, shape index: {}]   ;;  %s3462_s7 = inlined_call_operand.hbm [shape: bf16[128,256], index: 7, kind: input, shape index: {}]   ;;  %s3463_s8 = inlined_call_operand.hbm [shape: f32[8,256], index: 8, kind: input, shape index: {}]   ;;  %s3464_s9 = inlined_call_operand.hbm [shape: bf16[96,128], index: 9, kind: output, shape index: {0}]   ;;  %s3465_s10 = inlined_call_operand.hbm [shape: f32[96,128], index: 10, kind: output, shape index: {1}]  }
   0x1   :  { %3473 = sst [smem:[#allocation32_spill]] %s3457_s2 }
   0x2   :  { %3474 = sst [smem:[#allocation33_spill]] %s3458_s3 }
   0x3   :  { %16 = vsyncpa [#allocation3], 0 }
   0x4   :  { %18 = vsyncpa [#allocation3 + $0x1], 0 }
   0x5   :  { %19 = vsyncpa [#allocation6], 0 }
   0x6   :  { %21 = vsyncpa [#allocation6 + $0x1], 0 }
   0x7   :  { %22 = vsyncpa [#allocation9], 0 }
   0x8   :  { %23 = vsyncpa [#allocation12], 0 }
   0x9   :  { %24 = vsyncpa [#allocation15], 0 }
   0xa   :  { %25 = vsyncpa [#allocation4], 0 }
   0xb   :  { %27 = vsyncpa [#allocation4 + $0x1], 0 }
   0xc   :  { %28 = vsyncpa [#allocation19], 0 }
   0xd   :  { %30 = vsyncpa [#allocation19 + $0x1], 0  ;;  %s2824_s13 = smov 0   ;;  %s2826_s14 = smov 0  }
   0xe   :  { %s2828_s15 = smov 0   ;;  %s2830_s16 = smov 0  }
   0xf LB: > { %3475 = sst [smem:[#allocation28_spill]] %s2731_s13  ;;  %s2845_s17 = sadd.s32 4294967295, %s2743_s16   ;;  %s2743_s16 = sphi %s2830_s16, %s3503_s16   ;;  %s2739_s15 = sphi %s2828_s15, %s3507_s15   ;;  %s2735_s14 = sphi %s2826_s14, %s3506_s14   ;;  %s2731_s13 = sphi %s2824_s13, %s3505_s13  }
  0x10   : > { %s1926_s18 = sadd.s32 4294967294, %s2743_s16   ;;  %s2849_s19 = sadd.s32 1, %s2743_s16  }
  0x11   : > { %3476 = sst [smem:[#allocation29_spill]] %s2849_s19  ;;  %s43_s20 = sadd.s32 1, %s2739_s15 }
  0x12   : > { %s40_s21 = ssub.s32 %s2743_s16, %s2849_s19  ;;  %p50_p0 = scmp.ne.s32.totalorder %s2739_s15, %s2735_s14 }
  0x13   : > { %p41_p1 = scmp.eq.s32.totalorder %s40_s21, 0  ;;  %p51_p2 = scmp.eq.s32.totalorder %s2743_s16, 0 }
  0x14   : > { %p56_p3 = scmp.ne.s32.totalorder %s2735_s14, %s2731_s13  ;;  %p3466_p4 = scmp.eq.s32.totalorder %s2845_s17, 0 }
  0x15   : > { %s2861_s22 = scalar_select %p41_p1, %s2739_s15, %s43_s20  }
  0x16   : > { %p2863_p5 = por %p51_p2, %p50_p0  ;;  %p2869_p6 = por %p3466_p4, %p56_p3 }
  0x17   : > { %3477 = sst [smem:[#allocation30_spill]] %s2861_s22  ;;  %p253_p7 = scmp.eq.s32.totalorder %s2845_s17, 1 }
  0x18   : > { %s3479_s24 = scalar_select %p2869_p6, 1, 0 }
  0x19   : > { %p259_p8 = scmp.eq.s32.totalorder %s1926_s18, 1  ;;  %p1927_p9 = scmp.ge.s32.totalorder %s2743_s16, 1 }
  0x1a   : > { %p292_p10 = scmp.lt.s32.totalorder %s2743_s16, 3  ;;  %p2876_p11 = por %p253_p7, %p50_p0 }
  0x1b   : > { %p2880_p12 = por %p259_p8, %p56_p3  ;;  %s2745_s28 = smov [#allocation8]  }
  0x1c   : > { %s3480_s25 = scalar_select %p2876_p11, 1, 0 }
  0x1d   : > { %s3481_s26 = scalar_select %p2880_p12, 1, 0 }
  0x1e   : > { %p2884_p13 = pnand %p1927_p9, %p292_p10  ;;  %s317_s29 = sshll.u32 %s2745_s28, 4  ;;  %s318_s29 = int_to_ptr.vmem [resolvable:$true] %s317_s29 }
  0x1f   : > { %3482 = sst [smem:[#allocation31_spill]] %s3481_s26  ;;  %s2746_s11 = smov [#allocation11]  }
  0x20   : > { %p2179_p1 = pneg %p2884_p13  ;;  %s343_s12 = sshll.u32 %s2746_s11, 4  ;;  %s344_s12 = int_to_ptr.vmem [resolvable:$true] %s343_s12 }
  0x21   : > { %s2406_s20 = scalar_lea.vmem %s318_s29, 512  ;;  %p2414_p9 = scmp.lt.s32.totalorder %s318_s29, %s318_s29 }
  0x22   : > { %p2892_p2 = pnand %p2179_p1, %p3466_p4  ;;  %p2407_p3 = scmp.ne.s32.totalorder %s318_s29, %s2406_s20 }
  0x23   : > { %p2415_p10 = scmp.lt.s32.totalorder %s2406_s20, %s2406_s20 }
  0x24   : > { %p2898_p0 = pneg %p2892_p2 }
  0x25   : > { %p2416_p1 = por %p2415_p10, %p2414_p9 }
  0x26   : > { %p2409_p7 = pnand %p2407_p3, %p2898_p0 }
  0x28   : > { %p2410_p8 = pneg %p2409_p7 }
  0x2a   : > { %p2417_p4 = pnand %p2416_p1, %p2410_p8 }
  0x2c   : > { %2420 = shalt.err (!%p2417_p4)
}
  0x2d   : > { %s2747_s21 = smov 128   ;;  %s2748_s28 = smov 8  }
  0x2e   : > { %s3486_s3 = sld [smem:[#allocation33_spill]]  ;;  %s2432_s19 = scalar_lea.vmem %s344_s12, 512 }
  0x2f   : > { %p2433_p3 = scmp.ne.s32.totalorder %s344_s12, %s2432_s19  ;;  %p2440_p9 = scmp.lt.s32.totalorder %s344_s12, %s344_s12 }
  0x30   : > { %p2441_p8 = scmp.lt.s32.totalorder %s2432_s19, %s2432_s19 }
  0x31   : > { %p2435_p7 = pnand %p2433_p3, %p2898_p0 }
  0x32   : > { %p2442_p4 = por %p2441_p8, %p2440_p9 }
  0x33   : > { %p2436_p12 = pneg %p2435_p7 }
  0x34   : > { %2185 = dma.hbm_to_vmem [thread:$0]  (!%p2892_p2), %s3486_s3, 512, %s318_s29, [#allocation9], %s2747_s21, %s2747_s21, %s2748_s28  }
  0x35   : > { %p2443_p10 = pnand %p2442_p4, %p2436_p12 }
  0x37   : > { %2446 = shalt.err (!%p2443_p10)
}
  0x38   : > { %2191 = dma.hbm_to_vmem [thread:$0]  (!%p2892_p2), %s3460_s5, 512, %s344_s12, [#allocation12], %s2747_s21, %s2747_s21, %s2748_s28  }
  0x39   : > { %s2749_s22 = smov [#allocation14]   ;;  %s2750_s11 = smov [#allocation7]  }
  0x3a   : > { %s369_s29 = sshll.u32 %s2749_s22, 4  ;;  %s304_s3 = sshll.u32 %s2750_s11, 4  ;;  %s370_s29 = int_to_ptr.vmem [resolvable:$true] %s369_s29  ;;  %s305_s3 = int_to_ptr.vmem [resolvable:$true] %s304_s3 }
  0x3b   : > { %s2458_s13 = scalar_lea.vmem %s370_s29, 2048  ;;  %p2466_p7 = scmp.lt.s32.totalorder %s370_s29, %s370_s29 }
  0x3c   : > { %p2459_p1 = scmp.ne.s32.totalorder %s370_s29, %s2458_s13  ;;  %p2467_p9 = scmp.lt.s32.totalorder %s2458_s13, %s2458_s13 }
  0x3e   : > { %p2461_p12 = pnand %p2459_p1, %p2898_p0  ;;  %p2468_p8 = por %p2467_p9, %p2466_p7 }
  0x40   : > { %p2462_p3 = pneg %p2461_p12 }
  0x42   : > { %p2469_p4 = pnand %p2468_p8, %p2462_p3 }
  0x44   : > { %2472 = shalt.err (!%p2469_p4)
}
  0x45   : > { %2197 = dma.hbm_to_vmem [thread:$0]  (!%p2892_p2), %s3462_s7, 2048, %s370_s29, [#allocation15], %s2747_s21, %s2747_s21, %s2748_s28  }
  0x46   : > { %s2484_s12 = scalar_lea.vmem %s305_s3, 256  ;;  %p2492_p11 = scmp.lt.s32.totalorder %s305_s3, %s305_s3 }
  0x47   : > { %p2485_p10 = scmp.ne.s32.totalorder %s305_s3, %s2484_s12  ;;  %p2493_p7 = scmp.lt.s32.totalorder %s2484_s12, %s2484_s12 }
  0x49   : > { %p2487_p1 = pnand %p2485_p10, %p2898_p0  ;;  %p2494_p3 = por %p2493_p7, %p2492_p11 }
  0x4b   : > { %p2488_p12 = pneg %p2487_p1 }
  0x4d   : > { %p2495_p9 = pnand %p2494_p3, %p2488_p12 }
  0x4f   : > { %2498 = shalt.err (!%p2495_p9)
}
  0x50   : > { %s3487_s2 = sld [smem:[#allocation32_spill]]  ;;  %s2751_s22 = smov [#allocation10]  }
  0x51   : > { %s330_s29 = sshll.u32 %s2751_s22, 4  ;;  %s2752_s11 = smov [#allocation13]   ;;  %s331_s29 = int_to_ptr.vmem [resolvable:$true] %s330_s29 }
  0x52   : > { %s356_s19 = sshll.u32 %s2752_s11, 4  ;;  %s2510_s26 = scalar_lea.vmem %s331_s29, 512  ;;  %s357_s19 = int_to_ptr.vmem [resolvable:$true] %s356_s19 }
  0x53   : > { %p2511_p8 = scmp.ne.s32.totalorder %s331_s29, %s2510_s26  ;;  %p2518_p10 = scmp.lt.s32.totalorder %s331_s29, %s331_s29 }
  0x54   : > { %p2519_p1 = scmp.lt.s32.totalorder %s2510_s26, %s2510_s26 }
  0x55   : > { %p2513_p11 = pnand %p2511_p8, %p2898_p0 }
  0x56   : > { %2182 = dma.hbm_to_vmem [thread:$0]  (!%p2892_p2), %s3487_s2, 256, %s305_s3, [#allocation6], %s2747_s21, %s2747_s21, %s2748_s28  }
  0x57   : > { %p2514_p4 = pneg %p2513_p11  ;;  %p2520_p12 = por %p2519_p1, %p2518_p10 }
  0x59   : > { %p2521_p7 = pnand %p2520_p12, %p2514_p4 }
  0x5b   : > { %2524 = shalt.err (!%p2521_p7)
}
  0x5c   : > { %2188 = dma.hbm_to_vmem [thread:$0]  (!%p2892_p2), %s3459_s4, 512, %s331_s29, [#allocation9], %s2747_s21, %s2747_s21, %s2748_s28  }
  0x5d   : > { %s2536_s13 = scalar_lea.vmem %s357_s19, 2048  ;;  %p2544_p11 = scmp.lt.s32.totalorder %s357_s19, %s357_s19 }
  0x5e   : > { %p2537_p3 = scmp.ne.s32.totalorder %s357_s19, %s2536_s13  ;;  %p2545_p10 = scmp.lt.s32.totalorder %s2536_s13, %s2536_s13 }
  0x60   : > { %p2539_p9 = pnand %p2537_p3, %p2898_p0  ;;  %p2546_p4 = por %p2545_p10, %p2544_p11 }
  0x62   : > { %p2540_p8 = pneg %p2539_p9 }
  0x64   : > { %p2547_p1 = pnand %p2546_p4, %p2540_p8 }
  0x66   : > { %2550 = shalt.err (!%p2547_p1)
}
  0x67   : > { %2194 = dma.hbm_to_vmem [thread:$0]  (!%p2892_p2), %s3461_s6, 2048, %s357_s19, [#allocation12], %s2747_s21, %s2747_s21, %s2748_s28  }
  0x68   : > { %s2753_s29 = smov [#allocation16]  }
  0x69   : > { %s383_s11 = sshll.u32 %s2753_s29, 4  ;;  %s384_s11 = int_to_ptr.vmem [resolvable:$true] %s383_s11 }
  0x6a   : > { %s2562_s26 = scalar_lea.vmem %s384_s11, 256  ;;  %p2570_p9 = scmp.lt.s32.totalorder %s384_s11, %s384_s11 }
  0x6b   : > { %p2563_p12 = scmp.ne.s32.totalorder %s384_s11, %s2562_s26  ;;  %p2571_p8 = scmp.lt.s32.totalorder %s2562_s26, %s2562_s26 }
  0x6d   : > { %p2565_p7 = pnand %p2563_p12, %p2898_p0  ;;  %p2572_p11 = por %p2571_p8, %p2570_p9 }
  0x6f   : > { %p2566_p3 = pneg %p2565_p7 }
  0x71   : > { %p2573_p10 = pnand %p2572_p11, %p2566_p3 }
  0x73   : > { %2576 = shalt.err (!%p2573_p10)
}
  0x74   : > { %2200 = dma.hbm_to_vmem [thread:$0]  (!%p2892_p2), %s3463_s8, 256, %s384_s11, [#allocation15]  }
  0x75   : > { %p3471_p4 = scmp.ge.s32.totalorder %s2743_s16, 2 }
  0x77   : > { %390 = sbr.rel (%p3471_p4) target bundleno = 188 (0xbc), region = 44 }
  0x7c   : > { %393 = sbr.rel (!%p2863_p5) target bundleno = 156 (0x9c), region = 48  ;;  %s394_s18 = sand.u32 (%p2863_p5), 1, %s2739_s15  }
  0x7d   : > { %s1937_s21 = sshll.u32 (%p2863_p5), %s2743_s16, 3  ;;  %s1936_s28 = sshll.u32 (%p2863_p5), %s394_s18, 5 }
  0x7e   : > { %s400_s19 = ssub.s32 (%p2863_p5), 12, %s1937_s21  ;;  %s2979_s20 = scalar_lea.sflag (%p2863_p5), [#allocation3], %s394_s18 }
  0x7f   : > { %p401_p0 = scmp.lt.s32.totalorder (%p2863_p5), %s400_s19, 8  ;;  %s398_s22 = scalar_lea.vmem (%p2863_p5), [#allocation2], %s1936_s28 }
  0x81   : > { %s3509_s19 = smov (!%p401_p0, %s400_s19), 8 }
  0x82   : > { %s2976_s30 = sshll.u32 %s3509_s19, 6 }
  0x83   : > { %s405_s13 = ssub.s32 512, %s2976_s30 }
  0x84   : > { %406 = vsyncadd %s2979_s20, %s405_s13  ;;  %p1939_p2 = scmp.ne.s32.totalorder %s2976_s30, 0  ;;  %s2054_s29 = sshll.u32 %s2743_s16, 9 }
  0x85   : > { %s2987_s3 = scalar_lea.hbm %s3455_s0, %s2054_s29  ;;  %s411_s12 = sshll.u32 %s398_s22, 4  ;;  %s2989_s12 = int_to_ptr.vmem [resolvable:$true] %s411_s12 }
  0x86   : > { %s2577_s18 = scalar_lea.hbm %s2987_s3, %s2976_s30  ;;  %s2581_s19 = scalar_lea.hbm %s3455_s0, 768 }
  0x87   : > { %p2578_p1 = scmp.ne.s32.totalorder %s2987_s3, %s2577_s18  ;;  %p2582_p3 = scmp.lt.s32.totalorder %s2987_s3, %s3455_s0 }
  0x88   : > { %p2583_p9 = scmp.lt.s32.totalorder %s2581_s19, %s2577_s18 }
  0x89   : > { %p2579_p12 = pnand %p2578_p1, %p1939_p2 }
  0x8a   : > { %p2584_p8 = por %p2583_p9, %p2582_p3 }
  0x8b   : > { %p2580_p7 = pneg %p2579_p12 }
  0x8d   : > { %p2585_p11 = pnand %p2584_p8, %p2580_p7 }
  0x8f   : > { %2588 = shalt.err (!%p2585_p11)
}
  0x90   : > { %s2589_s22 = scalar_lea.vmem %s2989_s12, %s2976_s30  ;;  %s2754_s29 = smov [#allocation2]  }
  0x91   : > { %p2590_p10 = scmp.ne.s32.totalorder %s2989_s12, %s2589_s22  ;;  %s2593_s11 = sshll.u32 %s2754_s29, 4  ;;  %s2594_s11 = int_to_ptr.vmem [resolvable:$false] %s2593_s11 }
  0x92   : > { %s2595_s26 = scalar_lea.vmem %s2594_s11, 1024  ;;  %p2596_p12 = scmp.lt.s32.totalorder %s2989_s12, %s2594_s11 }
  0x93   : > { %p2591_p0 = pnand %p2590_p10, %p1939_p2  ;;  %p2597_p4 = scmp.lt.s32.totalorder %s2595_s26, %s2589_s22 }
  0x95   : > { %p2592_p1 = pneg %p2591_p0  ;;  %p2598_p6 = por %p2597_p4, %p2596_p12 }
  0x97   : > { %p2599_p3 = pnand %p2598_p6, %p2592_p1 }
  0x99   : > { %2602 = shalt.err (!%p2599_p3)
}
  0x9a   : > { %s2755_s2 = smov 64   ;;  %s2756_s18 = smov 4  }
  0x9b   : > { %417 = dma.hbm_to_vmem [thread:$0]  (%p1939_p2), %s2987_s3, %s2976_s30, %s2989_s12, %s2979_s20, %s2755_s2, %s2755_s2, %s2756_s18  }
  0x9c PF: > { %420 = sbr.rel (!%p2863_p5) target bundleno = 188 (0xbc), region = 52  ;;  %s421_s21 = sand.u32 (%p2863_p5), 1, %s2743_s16  }
  0x9d   : > { %s423_s28 = sand.u32 (%p2863_p5), 1, %s2739_s15   ;;  %s1944_s13 = sshll.u32 (%p2863_p5), %s2743_s16, 3 }
  0x9e   : > { %s1943_s19 = sshll.u32 (%p2863_p5), %s423_s28, 6  ;;  %s427_s22 = ssub.s32 (%p2863_p5), 12, %s1944_s13 }
  0x9f   : > { %p428_p6 = scmp.lt.s32.totalorder (%p2863_p5), %s427_s22, 8  ;;  %s3023_s26 = scalar_lea.sflag (%p2863_p5), [#allocation6], %s421_s21 }
  0xa0   : > { %s425_s30 = scalar_lea.vmem (%p2863_p5), [#allocation5], %s1943_s19 }
  0xa1   : > { %s3511_s22 = smov (!%p428_p6, %s427_s22), 8 }
  0xa2   : > { %s3020_s29 = sshll.u32 %s3511_s22, 7 }
  0xa3   : > { %s432_s11 = ssub.s32 1024, %s3020_s29 }
  0xa4   : > { %433 = vsyncadd %s3023_s26, %s432_s11  ;;  %p1946_p5 = scmp.ne.s32.totalorder %s3020_s29, 0  ;;  %s2055_s23 = sshll.u32 %s2743_s16, 10 }
  0xa5   : > { %s3031_s12 = scalar_lea.hbm %s3456_s1, %s2055_s23  ;;  %s438_s2 = sshll.u32 %s425_s30, 4  ;;  %s3033_s2 = int_to_ptr.vmem [resolvable:$true] %s438_s2 }
  0xa6   : > { %s2603_s18 = scalar_lea.hbm %s3031_s12, %s3020_s29  ;;  %s2607_s19 = scalar_lea.hbm %s3456_s1, 1536 }
  0xa7   : > { %p2604_p4 = scmp.ne.s32.totalorder %s3031_s12, %s2603_s18  ;;  %p2608_p9 = scmp.lt.s32.totalorder %s3031_s12, %s3456_s1 }
  0xa8   : > { %p2609_p8 = scmp.lt.s32.totalorder %s2607_s19, %s2603_s18 }
  0xa9   : > { %p2605_p2 = pnand %p2604_p4, %p1946_p5 }
  0xaa   : > { %p2610_p11 = por %p2609_p8, %p2608_p9 }
  0xab   : > { %p2606_p7 = pneg %p2605_p2 }
  0xad   : > { %p2611_p10 = pnand %p2610_p11, %p2606_p7 }
  0xaf   : > { %2614 = shalt.err (!%p2611_p10)
}
  0xb0   : > { %s2615_s11 = scalar_lea.vmem %s3033_s2, %s3020_s29  ;;  %s2757_s30 = smov [#allocation5]  }
  0xb1   : > { %p2616_p0 = scmp.ne.s32.totalorder %s3033_s2, %s2615_s11  ;;  %s2619_s23 = sshll.u32 %s2757_s30, 4  ;;  %s2620_s23 = int_to_ptr.vmem [resolvable:$false] %s2619_s23 }
  0xb2   : > { %s2621_s20 = scalar_lea.vmem %s2620_s23, 2048  ;;  %p2622_p3 = scmp.lt.s32.totalorder %s3033_s2, %s2620_s23 }
  0xb3   : > { %p2617_p1 = pnand %p2616_p0, %p1946_p5  ;;  %p2623_p6 = scmp.lt.s32.totalorder %s2621_s20, %s2615_s11 }
  0xb5   : > { %p2618_p12 = pneg %p2617_p1  ;;  %p2624_p4 = por %p2623_p6, %p2622_p3 }
  0xb7   : > { %p2625_p2 = pnand %p2624_p4, %p2618_p12 }
  0xb9   : > { %2628 = shalt.err (!%p2625_p2)
}
  0xba   : > { %s2758_s3 = smov 128   ;;  %s2759_s18 = smov 8  }
  0xbb   : > { %444 = dma.hbm_to_vmem [thread:$0]  (%p1946_p5), %s3031_s12, %s3020_s29, %s3033_s2, %s3023_s26, %s2758_s3, %s2758_s3, %s2759_s18  }
  0xbc PF: > { %450 = sbr.rel (%p2884_p13) target bundleno = 1021 (0x3fd), region = 56  ;;  %s3062_s21 = sand.u32 (!%p2884_p13), 1, %s2735_s14  }
  0xbd   : > { %s1951_s28 = sshll.u32 (!%p2884_p13), %s3062_s21, 5  ;;  %s453_s19 = scalar_lea.sflag (!%p2884_p13), [#allocation3], %s3062_s21 }
  0xbe   : > { %s456_s13 = scalar_lea.vmem (!%p2884_p13), [#allocation2], %s1951_s28  ;;  %p3488_p7 = scmp.ne.s32.totalorder (!%p2884_p13), %s3479_s24, 0 }
  0xc1   : > { %2698 = dma.done.wait (%p3488_p7), %s453_s19, 512  }
  0xc2   : > { %2700 = vsyncadd (%p3488_p7), %s453_s19, 4294966784  ;;  %s461_s27 = sand.u32 1, %s2845_s17   ;;  %s1952_s29 = sshll.u32 %s3062_s21, 6 }
  0xc3   : > { %s462_s26 = scalar_lea.sflag [#allocation6], %s461_s27  ;;  %s3076_s12 = scalar_lea.vmem [#allocation5], %s1952_s29 }
  0xc4   : > { %2702 = dma.done.wait (%p3488_p7), %s462_s26, 1024  }
  0xc5   : > { %2704 = vsyncadd (%p3488_p7), %s462_s26, 4294966272  ;;  %p3489_p13 = scmp.eq.s32.totalorder %s2845_s17, 0 }
  0xc7   : > { %2706 = dma.done.wait (%p3489_p13), [#allocation6], 256   ;;  %p3490_p5 = pmov %p3489_p13 }
  0xc9   : > { %2708 = vsyncadd (%p3490_p5), [#allocation6], 4294967040  ;;  %p3491_p9 = pmov %p3490_p5 }
  0xca   : > { %p3492_p8 = pmov %p3490_p5 }
  0xcb   : > { %2710 = dma.done.wait (%p3491_p9), [#allocation9], 1024  }
  0xcc   : > { %2712 = vsyncadd (%p3492_p8), [#allocation9], 4294966272  ;;  %p3493_p11 = pmov %p3490_p5 }
  0xcd   : > { %p3494_p10 = pmov %p3490_p5 }
  0xce   : > { %2714 = dma.done.wait (%p3493_p11), [#allocation12], 2560  }
  0xcf   : > { %2716 = vsyncadd (%p3494_p10), [#allocation12], 4294964736  ;;  %p3495_p0 = pmov %p3490_p5 }
  0xd1   : > { %2718 = dma.done.wait (%p3495_p0), [#allocation15], 2304   ;;  %p3496_p1 = pmov %p3495_p0 }
  0xd2   : > { %v3098_v0 = vld [vmem:[%s456_s13] sm:$0xff]   ;;  %v3100_v1 = vld [vmem:[%s456_s13 + $0x8] sm:$0xff]   ;;  %v3102_v2 = vld [vmem:[%s456_s13 + $0x10] sm:$0xff]   ;;  %s2760_s24 = smov 64   ;;  %vm577_vm0 = vcmask 261120   ;;  %vm684_vm1 = vcmask 130048  }
  0xd3   : > { %2720 = vsyncadd (%p3496_p1), [#allocation15], 4294964992  ;;  %v3105_v3 = vunpack.c.l.bf16 %v3098_v0  ;;  %v3108_v4 = vunpack.c.h.bf16 %v3098_v0  ;;  %v3111_v5 = vunpack.c.l.bf16 %v3100_v1  ;;  %v3114_v6 = vunpack.c.h.bf16 %v3100_v1  ;;  %v3116_v7 = vld [vmem:[%s456_s13 + $0x18] sm:$0xff]   ;;  %v659_v8 = vld [vmem:[#allocation7 + $0x8] sm:$0xff]  ;;  %s2761_s2 = smov 96   ;;  %s3301_s22 = scalar_lea.vmem [#allocation18], %s1952_s29 }
  0xd4   : > { %v658_v9 = vld [vmem:[#allocation7] sm:$0xff]  ;;  %v3119_v10 = vunpack.c.l.bf16 %v3102_v2  ;;  %v3122_v11 = vunpack.c.h.bf16 %v3102_v2  ;;  %v3125_v12 = vunpack.c.l.bf16 %v3116_v7  ;;  %v3128_v13 = vunpack.c.h.bf16 %v3116_v7  ;;  %2111 = vmatprep.subr.mxu0 %v659_v8  ;;  %v809_v18 = vld [vmem:[#allocation8 + $0x18] sm:$0xff]  ;;  %v807_v40 = vld [vmem:[#allocation8 + $0x8] sm:$0xff]  ;;  %s3309_s11 = scalar_lea.vmem [#allocation17], %s1951_s28  ;;  %s1686_s30 = scalar_lea.sflag [#allocation4], %s3062_s21 }
  0xd5   : > { %v2275_v14 = vpack.i.bf16 %v3108_v4, %v3105_v3  ;;  %2112 = vmatpush3.msra.mxu0 %v659_v8  ;;  %v2280_v16 = vpack.i.bf16 %v3114_v6, %v3111_v5  ;;  %v808_v19 = vld [vmem:[#allocation8 + $0x10] sm:$0xff]  ;;  %2127 = vmatprep.subr.mxu1 %v809_v18  ;;  %v578_v20 = vsel %vm577_vm0, %v3105_v3, -inf  ;;  %v584_v21 = vsel %vm577_vm0, %v3111_v5, -inf  ;;  %v806_v41 = vld [vmem:[#allocation8] sm:$0xff]  ;;  %s1691_s23 = scalar_lea.sflag [#allocation19], %s3062_s21  ;;  %p3497_p12 = scmp.ne.s32.totalorder %s3480_s25, 0 }
  0xd6   : > { %v2285_v15 = vpack.i.bf16 %v3122_v11, %v3119_v10  ;;  %2113 = vmatprep.subr.mxu0 %v658_v9  ;;  %v2290_v17 = vpack.i.bf16 %v3128_v13, %v3125_v12  ;;  %2128 = vmatpush3.msra.mxu1 %v809_v18  ;;  %v581_v22 = vsel %vm577_vm0, %v3108_v4, -inf  ;;  %v587_v23 = vsel %vm577_vm0, %v3114_v6, -inf  ;;  %v2299_v44 = vld [vmem:[#allocation11 + $0x10] ss:$8 sps:$4 sm:$0xff]   ;;  %v2301_v45 = vld [vmem:[#allocation11 + $0x14] ss:$8 sps:$4 sm:$0xff]  }
  0xd7   : > { %2276 = vrot.lane.b32.xlu0 %v2275_v14, %s2760_s24  ;;  %2114 = vmatpush3.msra.mxu0 %v658_v9  ;;  %v590_v24 = vsel %vm577_vm0, %v3119_v10, -inf  ;;  %v593_v25 = vsel %vm577_vm0, %v3122_v11, -inf  ;;  %v596_v26 = vsel %vm577_vm0, %v3125_v12, -inf  ;;  %v599_v27 = vsel %vm577_vm0, %v3128_v13, -inf  ;;  %v2304_v48 = vld [vmem:[#allocation11 + $0x4] ss:$8 sps:$4 sm:$0xff]  }
  0xd8   : > { %2286 = vrot.lane.b32.xlu1 %v2285_v15, %s2760_s24  ;;  %2129 = vmatprep.subr.mxu1 %v808_v19  ;;  %v2302_v51 = vld [vmem:[#allocation11] ss:$8 sps:$4 sm:$0xff]   ;;  %v2762_v52 = vmov 0   ;;  %v2307_v54 = vld [vmem:[#allocation13 + $0x74] ss:$8 sps:$4 sm:$0xff]   ;;  %s2040_s20 = sshll.u32 (%p3497_p12), %s2845_s17, 3 }
  0xd9   : > { %2130 = vmatpush3.msra.mxu1 %v808_v19  ;;  %1012 = vmatprep.subr.bf16.mxu0 %v2301_v45  ;;  %v2325_v57 = vld [vmem:[#allocation10 + $0x14] ss:$8 sps:$4 sm:$0xff]   ;;  %v2305_v9 = vld [vmem:[#allocation13 + $0x70] ss:$8 sps:$4 sm:$0xff]   ;;  %v2310_v14 = vld [vmem:[#allocation13 + $0x64] ss:$8 sps:$4 sm:$0xff]  }
  0xda   : > { %2131 = vmatprep.subr.mxu1 %v807_v40  ;;  %v2313_v18 = vld [vmem:[#allocation13 + $0x54] ss:$8 sps:$4 sm:$0xff]   ;;  %v2311_v19 = vld [vmem:[#allocation13 + $0x50] ss:$8 sps:$4 sm:$0xff]   ;;  %s1699_s3 = ssub.s32 (%p3497_p12), 12, %s2040_s20 }
  0xdb   : > { %2281 = vrot.lane.b32.xlu0 %v2280_v16, %s2760_s24  ;;  %2132 = vmatpush3.msra.mxu1 %v807_v40  ;;  %p1700_p3 = scmp.lt.s32.totalorder (%p3497_p12), %s1699_s3, 8 }
  0xdc   : > { %2291 = vrot.lane.b32.xlu1 %v2290_v17, %s2760_s24  ;;  %2133 = vmatprep.subr.mxu1 %v806_v41 }
  0xdd   : > { %2134 = vmatpush3.msra.mxu1 %v806_v41  ;;  %v2334_v41 = vld [vmem:[#allocation13 + $0x4] ss:$8 sps:$4 sm:$0xff]  }
  0xde   : > { %1161 = vmatprep.subr.bf16.mxu1 %v2325_v57 }
  0xfa   : > { %579 = vmax.xlane.f32.xlu0 %v578_v20  ;;  %v2316_v20 = vld [vmem:[#allocation13 + $0x44] ss:$8 sps:$4 sm:$0xff]  }
  0xfe   : > { %585 = vmax.xlane.f32.xlu0 %v584_v21 }
 0x100   : > { %582 = vmax.xlane.f32.xlu1 %v581_v22 }
 0x102   : > { %588 = vmax.xlane.f32.xlu0 %v587_v23 }
 0x104   : > { %591 = vmax.xlane.f32.xlu1 %v590_v24 }
 0x106   : > { %594 = vmax.xlane.f32.xlu0 %v593_v25  ;;  %v2314_v25 = vld [vmem:[#allocation13 + $0x40] ss:$8 sps:$4 sm:$0xff]  }
 0x108   : > { %597 = vmax.xlane.f32.xlu1 %v596_v26  ;;  %v2319_v26 = vld [vmem:[#allocation13 + $0x34] ss:$8 sps:$4 sm:$0xff]  }
 0x10a   : > { %600 = vmax.xlane.f32.xlu0 %v599_v27 }
 0x119   : > { %1109 = vrot.lane.b32.xlu1 %v3098_v0, %s2761_s2 }
 0x11d   : > { %1113 = vrot.lane.b32.xlu1 %v3102_v2, %s2761_s2 }
 0x120   : > { %1111 = vrot.lane.b32.xlu0 %v3100_v1, %s2761_s2 }
 0x121   : > { %1115 = vrot.lane.b32.xlu1 %v3116_v7, %s2761_s2 }
 0x149   : > { %v2277_v28 = vpop.permute.xlu0 %2276 }
 0x14a   : > { %v2279_v29 = vunpack.i.h.bf16 %v2277_v28  ;;  %v2278_v30 = vunpack.i.l.bf16 %v2277_v28  ;;  %v2287_v31 = vpop.permute.xlu1 %2286 }
 0x14b   : > { %v2288_v35 = vunpack.i.l.bf16 %v2287_v31  ;;  %v2289_v37 = vunpack.i.h.bf16 %v2287_v31 }
 0x14c   : > { %2115 = vmatprep.mubr.msk.f32.mxu0 %vm684_vm1, %v2278_v30  ;;  %v2322_v30 = vld [vmem:[#allocation13 + $0x24] ss:$8 sps:$4 sm:$0xff]  }
 0x14d   : > { %v2282_v32 = vpop.permute.xlu0 %2281  ;;  %2116 = vmatmul.mubr.msk.f32.vlgmr.msra.gmra.mxu0 %vm684_vm1, %v2279_v29  ;;  %v2317_v29 = vld [vmem:[#allocation13 + $0x30] ss:$8 sps:$4 sm:$0xff]  }
 0x14e   : > { %v2284_v33 = vunpack.i.h.bf16 %v2282_v32  ;;  %v2283_v34 = vunpack.i.l.bf16 %v2282_v32  ;;  %v2292_v36 = vpop.permute.xlu1 %2291  ;;  %1013 = vmatpush1.bf16.msra.mxu0 %v2299_v44  ;;  %v949_v44 = vld [vmem:[%s3076_s12 + $0x8] sm:$0xff] }
 0x14f   : > { %v2293_v38 = vunpack.i.l.bf16 %v2292_v36  ;;  %v2294_v39 = vunpack.i.h.bf16 %v2292_v36  ;;  %1014 = vmatprep.subr.bf16.mxu0 %v2304_v48  ;;  %v2328_v36 = vld [vmem:[#allocation13 + $0x14] ss:$8 sps:$4 sm:$0xff]   ;;  %v951_v48 = vld [vmem:[%s3076_s12 + $0x18] sm:$0xff] }
 0x150   : > { %2118 = vmatprep.mubr.msk.f32.mxu0 %vm684_vm1, %v2283_v34  ;;  %v2320_v34 = vld [vmem:[#allocation13 + $0x20] ss:$8 sps:$4 sm:$0xff]  }
 0x151   : > { %2119 = vmatmul.mubr.msk.f32.gmra.mxu0 %vm684_vm1, %v2284_v33 }
 0x152   : > { %2121 = vmatprep.mubr.msk.f32.mxu0 %vm684_vm1, %v2288_v35  ;;  %1015 = vmatpush1.bf16.msra.mxu0 %v2302_v51  ;;  %v953_v51 = vld [vmem:[%s3076_s12 + $0x28] sm:$0xff] }
 0x153   : > { %1322 = vmatprep.subr.bf16.mxu0 %v2307_v54  ;;  %v954_v54 = vld [vmem:[%s3076_s12 + $0x30] sm:$0xff] }
 0x155   : > { %2122 = vmatmul.mubr.msk.f32.gmra.mxu0 %vm684_vm1, %v2289_v37 }
 0x156   : > { %2124 = vmatprep.mubr.msk.f32.mxu0 %vm684_vm1, %v2293_v38 }
 0x159   : > { %2125 = vmatmul.mubr.msk.f32.gmra.mxu0 %vm684_vm1, %v2294_v39  ;;  %v2326_v39 = vld [vmem:[#allocation13 + $0x10] ss:$8 sps:$4 sm:$0xff]  }
 0x15a   : > { %1032 = vmatprep.mubr.bf16.mxu0 %v2762_v52 }
 0x183   : > { %v580_v43 = vpop.xlane.xlu0 %579 }
 0x184   : > { %v602_v47 = vsub.f32 %v3105_v3, %v580_v43  ;;  %v948_v43 = vld [vmem:[%s3076_s12] sm:$0xff] }
 0x186   : > { %v610_v50 = vmul.f32 1.442695, %v602_v47  ;;  %v950_v47 = vld [vmem:[%s3076_s12 + $0x10] sm:$0xff] }
 0x187   : > { %v586_v53 = vpop.xlane.xlu0 %585 }
 0x188   : > { %v604_v55 = vsub.f32 %v3111_v5, %v586_v53 }
 0x189   : > { %v583_v42 = vpop.xlane.xlu1 %582 }
 0x18a   : > { %v603_v46 = vsub.f32 %v3108_v4, %v583_v42  ;;  %v614_v58 = vmul.f32 1.442695, %v604_v55  ;;  %v2332_v42 = vld [vmem:[#allocation13] ss:$8 sps:$4 sm:$0xff]  }
 0x18b   : > { %v589_v59 = vpop.xlane.xlu0 %588  ;;  %v955_v55 = vld [vmem:[%s3076_s12 + $0x38] sm:$0xff] }
 0x18c   : > { %v612_v49 = vmul.f32 1.442695, %v603_v46  ;;  %v605_v60 = vsub.f32 %v3114_v6, %v589_v59  ;;  %v1222_v46 = vpack.c.bf16 %v949_v44, %v948_v43 }
 0x18d   : > { %v592_v56 = vpop.xlane.xlu1 %591 }
 0x18e   : > { %2363 = vpow2.f32 %v612_v49  ;;  %v606_v61 = vsub.f32 %v3119_v10, %v592_v56  ;;  %v616_v62 = vmul.f32 1.442695, %v605_v60  ;;  %v1223_v49 = vpack.c.bf16 %v951_v48, %v950_v47  ;;  %v2331_v60 = vld [vmem:[#allocation10 + $0x4] ss:$8 sps:$4 sm:$0xff]  }
 0x18f   : > { %2365 = vpow2.f32 %v610_v50  ;;  %v595_v63 = vpop.xlane.xlu0 %594  ;;  %v952_v50 = vld [vmem:[%s3076_s12 + $0x20] sm:$0xff]  ;;  %v1225_v56 = vpack.c.bf16 %v955_v55, %v954_v54 }
 0x190   : > { %2367 = vpow2.f32 %v614_v58  ;;  %v618_v0 = vmul.f32 1.442695, %v606_v61  ;;  %v607_v1 = vsub.f32 %v3122_v11, %v595_v63  ;;  %v2308_v11 = vld [vmem:[#allocation13 + $0x60] ss:$8 sps:$4 sm:$0xff]   ;;  %v1224_v53 = vpack.c.bf16 %v953_v51, %v952_v50  ;;  %v2323_v58 = vld [vmem:[#allocation10 + $0x10] ss:$8 sps:$4 sm:$0xff]  }
 0x191   : > { %2369 = vpow2.f32 %v616_v62  ;;  %v598_v2 = vpop.xlane.xlu1 %597  ;;  %v2329_v62 = vld [vmem:[#allocation10] ss:$8 sps:$4 sm:$0xff]  }
 0x192   : > { %v620_v3 = vmul.f32 1.442695, %v607_v1  ;;  %2371 = vpow2.f32 %v618_v0  ;;  %v608_v5 = vsub.f32 %v3125_v12, %v598_v2  ;;  %v2337_v0 = vld [vmem:[#allocation14 + $0x74] ss:$8 sps:$4 sm:$0xff]  }
 0x193   : > { %v601_v4 = vpop.xlane.xlu0 %600 }
 0x194   : > { %2373 = vpow2.f32 %v620_v3  ;;  %v609_v8 = vsub.f32 %v3128_v13, %v601_v4  ;;  %v622_v15 = vmul.f32 1.442695, %v608_v5 }
 0x195   : > { %v1110_v5 = vpop.permute.xlu1 %1109 }
 0x196   : > { %v624_v16 = vmul.f32 1.442695, %v609_v8  ;;  %2375 = vpow2.f32 %v622_v15  ;;  %v2340_v8 = vld [vmem:[#allocation14 + $0x64] ss:$8 sps:$4 sm:$0xff]  }
 0x197   : > { %v2346_v15 = vld [vmem:[#allocation14 + $0x44] ss:$8 sps:$4 sm:$0xff]  }
 0x198   : > { %2377 = vpow2.f32 %v624_v16  ;;  %v2344_v16 = vld [vmem:[#allocation14 + $0x40] ss:$8 sps:$4 sm:$0xff]  }
 0x19b   : > { %v2364_v7 = vpop.eup %2363 }
 0x19c   : > { %v2366_v6 = vpop.eup %2365  ;;  %v629_v35 = vsel %vm577_vm0, %v2364_v7, 0.0 }
 0x19d   : > { %v960_v10 = vpack.c.bf16 %v2364_v7, %v2366_v6  ;;  %v2368_v17 = vpop.eup %2367  ;;  %v626_v21 = vsel %vm577_vm0, %v2366_v6, 0.0  ;;  %630 = vadd.xlane.f32.xlu1 %v629_v35  ;;  %v2335_v7 = vld [vmem:[#allocation14 + $0x70] ss:$8 sps:$4 sm:$0xff]   ;;  %v2338_v6 = vld [vmem:[#allocation14 + $0x60] ss:$8 sps:$4 sm:$0xff]  }
 0x19e   : > { %v2370_v12 = vpop.eup %2369  ;;  %627 = vadd.xlane.f32.xlu0 %v626_v21  ;;  %v632_v23 = vsel %vm577_vm0, %v2368_v17, 0.0  ;;  %v2353_v21 = vld [vmem:[#allocation14 + $0x10] ss:$8 sps:$4 sm:$0xff]  }
 0x19f   : > { %1982 = vmatmul.mubr.msk.bf16.vlgmr.msra.gmra.mxu0 %vm577_vm0, %v960_v10  ;;  %v961_v13 = vpack.c.bf16 %v2370_v12, %v2368_v17  ;;  %v2372_v22 = vpop.eup %2371  ;;  %v635_v28 = vsel %vm577_vm0, %v2370_v12, 0.0  ;;  %v1112_v10 = vpop.permute.xlu0 %1111  ;;  %v2352_v12 = vld [vmem:[#allocation14 + $0x24] ss:$8 sps:$4 sm:$0xff]  }
 0x1a0   : > { %1323 = vmatpush1.bf16.msra.mxu0 %v2305_v9  ;;  %1042 = vmatprep.mubr.bf16.mxu0 %v2762_v52  ;;  %v638_v40 = vsel %vm577_vm0, %v2372_v22, 0.0  ;;  %v2343_v9 = vld [vmem:[#allocation14 + $0x54] ss:$8 sps:$4 sm:$0xff]   ;;  %v1114_v17 = vpop.permute.xlu1 %1113 }
 0x1a1   : > { %1324 = vmatprep.subr.bf16.mxu0 %v2310_v14  ;;  %v2374_v24 = vpop.eup %2373  ;;  %639 = vadd.xlane.f32.xlu1 %v638_v40  ;;  %v2341_v14 = vld [vmem:[#allocation14 + $0x50] ss:$8 sps:$4 sm:$0xff]  }
 0x1a2   : > { %633 = vadd.xlane.f32.xlu0 %v632_v23  ;;  %v962_v27 = vpack.c.bf16 %v2374_v24, %v2372_v22  ;;  %v641_v32 = vsel %vm577_vm0, %v2374_v24, 0.0  ;;  %v2358_v22 = vld [vmem:[#allocation14 + $0x4] ss:$8 sps:$4 sm:$0xff]   ;;  %v2356_v23 = vld [vmem:[#allocation14] ss:$8 sps:$4 sm:$0xff]  }
 0x1a3   : > { %v2376_v31 = vpop.eup %2375  ;;  %v810_v24 = vld [vmem:[#allocation16] ss:$0 sm:$0xff] }
 0x1a4   : > { %1325 = vmatpush1.bf16.msra.mxu0 %v2308_v11  ;;  %v644_v45 = vsel %vm577_vm0, %v2376_v31, 0.0  ;;  %v2349_v11 = vld [vmem:[#allocation14 + $0x34] ss:$8 sps:$4 sm:$0xff]  }
 0x1a5   : > { %1326 = vmatprep.subr.bf16.mxu0 %v2313_v18  ;;  %v2378_v33 = vpop.eup %2377  ;;  %645 = vadd.xlane.f32.xlu1 %v644_v45  ;;  %v2347_v18 = vld [vmem:[#allocation14 + $0x30] ss:$8 sps:$4 sm:$0xff]  }
 0x1a6   : > { %636 = vadd.xlane.f32.xlu0 %v635_v28  ;;  %v963_v37 = vpack.c.bf16 %v2378_v33, %v2376_v31  ;;  %v647_v38 = vsel %vm577_vm0, %v2378_v33, 0.0 }
 0x1a7   : > { %1983 = vmatmul.mubr.msk.bf16.gmra.mxu0 %vm577_vm0, %v961_v13  ;;  %v2350_v13 = vld [vmem:[#allocation14 + $0x20] ss:$8 sps:$4 sm:$0xff]  }
 0x1a8   : > { %1327 = vmatpush1.bf16.msra.mxu0 %v2311_v19  ;;  %1052 = vmatprep.mubr.bf16.mxu0 %v2762_v52  ;;  %v1116_v19 = vpop.permute.xlu1 %1115 }
 0x1a9   : > { %1328 = vmatprep.subr.bf16.mxu0 %v2316_v20  ;;  %v2355_v20 = vld [vmem:[#allocation14 + $0x14] ss:$8 sps:$4 sm:$0xff]  }
 0x1aa   : > { %642 = vadd.xlane.f32.xlu0 %v641_v32 }
 0x1ac   : > { %1329 = vmatpush1.bf16.msra.mxu0 %v2314_v25 }
 0x1ad   : > { %1330 = vmatprep.subr.bf16.mxu0 %v2319_v26 }
 0x1ae   : > { %648 = vadd.xlane.f32.xlu0 %v647_v38 }
 0x1af   : > { %1984 = vmatmul.mubr.msk.bf16.gmra.mxu0 %vm577_vm0, %v962_v27 }
 0x1b0   : > { %1331 = vmatpush1.bf16.msra.mxu0 %v2317_v29  ;;  %1062 = vmatprep.mubr.bf16.mxu0 %v2762_v52 }
 0x1b1   : > { %1332 = vmatprep.subr.bf16.mxu0 %v2322_v30 }
 0x1b4   : > { %1333 = vmatpush1.bf16.msra.mxu0 %v2320_v34 }
 0x1b5   : > { %1334 = vmatprep.subr.bf16.mxu0 %v2328_v36 }
 0x1b7   : > { %1985 = vmatmul.mubr.msk.bf16.gmra.mxu0 %vm577_vm0, %v963_v37 }
 0x1b8   : > { %1335 = vmatpush1.bf16.msra.mxu0 %v2326_v39  ;;  %1354 = vmatprep.mubr.bf16.mxu0 %v2762_v52 }
 0x1b9   : > { %1336 = vmatprep.subr.bf16.mxu0 %v2334_v41 }
 0x1bc   : > { %1337 = vmatpush1.bf16.msra.mxu0 %v2332_v42 }
 0x1bf   : > { %1355 = vmatmul.mubr.bf16.vlgmr.msra.gmra.mxu0 %v1222_v46 }
 0x1c0   : > { %1364 = vmatprep.mubr.bf16.mxu0 %v2762_v52 }
 0x1c7   : > { %1365 = vmatmul.mubr.bf16.gmra.mxu0 %v1223_v49 }
 0x1c8   : > { %1374 = vmatprep.mubr.bf16.mxu0 %v2762_v52 }
 0x1cf   : > { %1375 = vmatmul.mubr.bf16.gmra.mxu0 %v1224_v53 }
 0x1d0   : > { %1384 = vmatprep.mubr.bf16.mxu0 %v2762_v52 }
 0x1d7   : > { %1385 = vmatmul.mubr.bf16.gmra.mxu0 %v1225_v56 }
 0x20d   : > { %v2117_v57 = vpop.f32.mrf.mxu0 }
 0x20f   : > { %v767_v59 = vpop.f32.mrf.mxu0 }
 0x210   : > { %2135 = vmatprep.mubr.msk.f32.mxu1 %vm577_vm0, %v767_v59 }
 0x211   : > { %v2120_v61 = vpop.f32.mrf.mxu0  ;;  %2136 = vmatmul.mubr.msk.f32.vlgmr.msra.gmra.mxu1 %vm577_vm0, %v2117_v57 }
 0x212   : > { %1162 = vmatpush1.bf16.msra.mxu1 %v2323_v58 }
 0x213   : > { %v777_v63 = vpop.f32.mrf.mxu0  ;;  %1163 = vmatprep.subr.bf16.mxu1 %v2331_v60 }
 0x214   : > { %2138 = vmatprep.mubr.msk.f32.mxu1 %vm577_vm0, %v777_v63 }
 0x215   : > { %2139 = vmatmul.mubr.msk.f32.gmra.mxu1 %vm577_vm0, %v2120_v61  ;;  %v2123_v1 = vpop.f32.mrf.mxu0 }
 0x216   : > { %1164 = vmatpush1.bf16.msra.mxu1 %v2329_v62 }
 0x217   : > { %v787_v2 = vpop.f32.mrf.mxu0  ;;  %1511 = vmatprep.subr.bf16.mxu1 %v2337_v0 }
 0x218   : > { %2141 = vmatprep.mubr.msk.f32.mxu1 %vm577_vm0, %v787_v2 }
 0x219   : > { %2142 = vmatmul.mubr.msk.f32.gmra.mxu1 %vm577_vm0, %v2123_v1  ;;  %v2126_v3 = vpop.f32.mrf.mxu0 }
 0x21b   : > { %v797_v4 = vpop.f32.mrf.mxu0 }
 0x21c   : > { %2144 = vmatprep.mubr.msk.f32.mxu1 %vm577_vm0, %v797_v4 }
 0x21d   : > { %2145 = vmatmul.mubr.msk.f32.gmra.mxu1 %vm577_vm0, %v2126_v3 }
 0x21e   : > { %1181 = vmatprep.mubr.bf16.mxu1 %v2762_v52 }
 0x221   : > { %1994 = vmatmul.mubr.msk.bf16.vlgmr.msra.gmra.mxu1 %vm577_vm0, %v1110_v5 }
 0x222   : > { %1191 = vmatprep.mubr.bf16.mxu1 %v2762_v52  ;;  %1512 = vmatpush1.bf16.msra.mxu1 %v2335_v7 }
 0x223   : > { %1513 = vmatprep.subr.bf16.mxu1 %v2340_v8 }
 0x226   : > { %1514 = vmatpush1.bf16.msra.mxu1 %v2338_v6 }
 0x227   : > { %1515 = vmatprep.subr.bf16.mxu1 %v2343_v9 }
 0x229   : > { %1995 = vmatmul.mubr.msk.bf16.gmra.mxu1 %vm577_vm0, %v1112_v10 }
 0x22a   : > { %1201 = vmatprep.mubr.bf16.mxu1 %v2762_v52  ;;  %1516 = vmatpush1.bf16.msra.mxu1 %v2341_v14 }
 0x22b   : > { %1517 = vmatprep.subr.bf16.mxu1 %v2346_v15 }
 0x22e   : > { %1518 = vmatpush1.bf16.msra.mxu1 %v2344_v16 }
 0x22f   : > { %1519 = vmatprep.subr.bf16.mxu1 %v2349_v11  ;;  %v628_v11 = vpop.xlane.xlu0 %627 }
 0x230   : > { %2379 = vrcp.f32 %v628_v11  ;;  %v1601_v11 = vld [vmem:[#allocation16 + $0x1] ss:$8 sm:$0x3] }
 0x231   : > { %1996 = vmatmul.mubr.msk.bf16.gmra.mxu1 %vm577_vm0, %v1114_v17 }
 0x232   : > { %1211 = vmatprep.mubr.bf16.mxu1 %v2762_v52  ;;  %1520 = vmatpush1.bf16.msra.mxu1 %v2347_v18 }
 0x233   : > { %1521 = vmatprep.subr.bf16.mxu1 %v2352_v12  ;;  %v631_v12 = vpop.xlane.xlu1 %630 }
 0x234   : > { %2381 = vrcp.f32 %v631_v12 }
 0x236   : > { %1522 = vmatpush1.bf16.msra.mxu1 %v2350_v13 }
 0x237   : > { %1523 = vmatprep.subr.bf16.mxu1 %v2355_v20  ;;  %v634_v20 = vpop.xlane.xlu0 %633 }
 0x238   : > { %2383 = vrcp.f32 %v634_v20 }
 0x239   : > { %1997 = vmatmul.mubr.msk.bf16.gmra.mxu1 %vm577_vm0, %v1116_v19 }
 0x23a   : > { %1543 = vmatprep.mubr.bf16.mxu1 %v2762_v52  ;;  %1524 = vmatpush1.bf16.msra.mxu1 %v2353_v21 }
 0x23b   : > { %1525 = vmatprep.subr.bf16.mxu1 %v2358_v22 }
 0x23e   : > { %1526 = vmatpush1.bf16.msra.mxu1 %v2356_v23  ;;  %v637_v23 = vpop.xlane.xlu0 %636 }
 0x23f   : > { %2385 = vrcp.f32 %v637_v23 }
 0x25f   : > { %v1034_v54 = vpop.f32.mrf.mxu0 }
 0x261   : > { %v1036_v55 = vpop.f32.mrf.mxu0 }
 0x263   : > { %v1038_v56 = vpop.f32.mrf.mxu0 }
 0x265   : > { %v1040_v57 = vpop.f32.mrf.mxu0 }
 0x267   : > { %v3222_v58 = vpop.f32.mrf.mxu0 }
 0x269   : > { %v3224_v59 = vpop.f32.mrf.mxu0 }
 0x26b   : > { %v3226_v60 = vpop.f32.mrf.mxu0 }
 0x26d   : > { %v3228_v61 = vpop.f32.mrf.mxu0 }
 0x26f   : > { %v3230_v62 = vpop.f32.mrf.mxu0 }
 0x271   : > { %v3232_v63 = vpop.f32.mrf.mxu0 }
 0x273   : > { %v3234_v0 = vpop.f32.mrf.mxu0 }
 0x275   : > { %v3236_v2 = vpop.f32.mrf.mxu0 }
 0x277   : > { %v3238_v4 = vpop.f32.mrf.mxu0 }
 0x279   : > { %v3240_v7 = vpop.f32.mrf.mxu0 }
 0x27b   : > { %v3244_v6 = vpop.f32.mrf.mxu0 }
 0x27d   : > { %v3248_v10 = vpop.f32.mrf.mxu0 }
 0x27f   : > { %v1356_v15 = vpop.f32.mrf.mxu0 }
 0x281   : > { %v1358_v17 = vpop.f32.mrf.mxu0 }
 0x283   : > { %v1360_v13 = vpop.f32.mrf.mxu0 }
 0x285   : > { %v1362_v21 = vpop.f32.mrf.mxu0 }
 0x2d1   : > { %v2137_v25 = vpop.f32.mrf.mxu1 }
 0x2d2   : > { %v907_v26 = vadd.f32 %v2137_v25, %v810_v24 }
 0x2d3   : > { %v901_v27 = vpop.f32.mrf.mxu1 }
 0x2d4   : > { %v902_v28 = vadd.f32 %v901_v27, %v810_v24  ;;  %v941_v30 = vmax.f32 %v907_v26, 0.0 }
 0x2d5   : > { %v2140_v29 = vpop.f32.mrf.mxu1 }
 0x2d6   : > { %v940_v31 = vmax.f32 %v902_v28, 0.0  ;;  %v917_v36 = vadd.f32 %v2140_v29, %v810_v24  ;;  %v640_v28 = vpop.xlane.xlu1 %639  ;;  %v2380_v29 = vpop.eup %2379 }
 0x2d7   : > { %v911_v32 = vpop.f32.mrf.mxu1  ;;  %2387 = vrcp.f32 %v640_v28 }
 0x2d8   : > { %v1411_v33 = vpack.c.bf16 %v941_v30, %v940_v31  ;;  %v912_v34 = vadd.f32 %v911_v32, %v810_v24  ;;  %v943_v39 = vmax.f32 %v917_v36, 0.0  ;;  %v643_v30 = vpop.xlane.xlu0 %642  ;;  %v1603_v31 = vlaneseq  ;;  %v2382_v32 = vpop.eup %2381 }
 0x2d9   : > { %v2143_v35 = vpop.f32.mrf.mxu1  ;;  %v1074_v36 = vmul.f32 %v2380_v29, %v1036_v55  ;;  %2389 = vrcp.f32 %v643_v30 }
 0x2da   : > { %1544 = vmatmul.mubr.bf16.vlgmr.msra.gmra.mxu1 %v1411_v33  ;;  %v942_v37 = vmax.f32 %v912_v34, 0.0  ;;  %v927_v41 = vadd.f32 %v2143_v35, %v810_v24  ;;  %v1073_v35 = vmul.f32 %v2380_v29, %v1034_v54 }
 0x2db   : > { %1553 = vmatprep.mubr.bf16.mxu1 %v2762_v52  ;;  %v921_v38 = vpop.f32.mrf.mxu1 }
 0x2dc   : > { %v1412_v40 = vpack.c.bf16 %v943_v39, %v942_v37  ;;  %v922_v42 = vadd.f32 %v921_v38, %v810_v24  ;;  %v945_v44 = vmax.f32 %v927_v41, 0.0  ;;  %v1075_v38 = vmul.f32 %v2382_v32, %v1038_v56  ;;  %v2384_v41 = vpop.eup %2383 }
 0x2dd   : > { %v2146_v43 = vpop.f32.mrf.mxu1  ;;  %v1604_v39 = vshrl.u32 %v1603_v31, 7  ;;  %v1078_v54 = vmul.f32 %v2384_v41, %v3224_v59 }
 0x2de   : > { %v944_v45 = vmax.f32 %v922_v42, 0.0  ;;  %v937_v48 = vadd.f32 %v2146_v43, %v810_v24 }
 0x2df   : > { %v931_v46 = vpop.f32.mrf.mxu1 }
 0x2e0   : > { %v1413_v47 = vpack.c.bf16 %v945_v44, %v944_v45  ;;  %v932_v49 = vadd.f32 %v931_v46, %v810_v24  ;;  %v947_v50 = vmax.f32 %v937_v48, 0.0  ;;  %v3260_v24 = vpop.f32.mrf.mxu0  ;;  %v1076_v44 = vmul.f32 %v2382_v32, %v1040_v57  ;;  %v646_v45 = vpop.xlane.xlu1 %645 }
 0x2e1   : > { %v1609_v46 = vsub.s32 1, %v1604_v39  ;;  %v2386_v48 = vpop.eup %2385  ;;  %2391 = vrcp.f32 %v646_v45 }
 0x2e2   : > { %1554 = vmatmul.mubr.bf16.gmra.mxu1 %v1412_v40  ;;  %v946_v51 = vmax.f32 %v932_v49, 0.0  ;;  %v3264_v26 = vpop.f32.mrf.mxu0  ;;  %v1079_v20 = vmul.f32 %v2386_v48, %v3226_v60  ;;  %v1080_v30 = vmul.f32 %v2386_v48, %v3228_v61 }
 0x2e3   : > { %1563 = vmatprep.mubr.bf16.mxu1 %v2762_v52  ;;  %v3282_v12 = vrot.slane %v1601_v11, %v1609_v46 }
 0x2e4   : > { %v1414_v53 = vpack.c.bf16 %v947_v50, %v946_v51  ;;  %v3268_v33 = vpop.f32.mrf.mxu0  ;;  %v649_v50 = vpop.xlane.xlu0 %648  ;;  %v1605_v51 = vsub.s32 0, %v1604_v39 }
 0x2e5   : > { %2393 = vrcp.f32 %v649_v50 }
 0x2e6   : > { %v3274_v40 = vpop.f32.mrf.mxu0  ;;  %v3285_v29 = vrot.slane %v1601_v11, %v1605_v51 }
 0x2e8   : > { %v3280_v55 = vpop.f32.mrf.mxu0 }
 0x2ea   : > { %1564 = vmatmul.mubr.bf16.gmra.mxu1 %v1413_v47  ;;  %v1378_v31 = vpop.f32.mrf.mxu0 }
 0x2eb   : > { %1573 = vmatprep.mubr.bf16.mxu1 %v2762_v52  ;;  %v1183_v52 = vpop.f32.mrf.mxu1 }
 0x2ec   : > { %v1184_v42 = vadd.f32 %v1183_v52, %v1073_v35 }
 0x2ed   : > { %v1185_v1 = vpop.f32.mrf.mxu1 }
 0x2ee   : > { %v1186_v43 = vadd.f32 %v1185_v1, %v1074_v36  ;;  %v1395_v52 = vadd.f32 %v1356_v15, %v1184_v42  ;;  %v2388_v15 = vpop.eup %2387 }
 0x2ef   : > { %v1187_v3 = vpop.f32.mrf.mxu1 }
 0x2f0   : > { %v1188_v49 = vadd.f32 %v1187_v3, %v1075_v38  ;;  %v1396_v1 = vadd.f32 %v1358_v17, %v1186_v43  ;;  %v2390_v38 = vpop.eup %2389  ;;  %v1380_v43 = vpop.f32.mrf.mxu0 }
 0x2f1   : > { %v1189_v5 = vpop.f32.mrf.mxu1  ;;  %v1084_v51 = vmul.f32 %v2390_v38, %v3236_v2 }
 0x2f2   : > { %1574 = vmatmul.mubr.bf16.gmra.mxu1 %v1414_v53  ;;  %v1077_v53 = vmul.f32 %v2384_v41, %v3222_v58  ;;  %v1190_v57 = vadd.f32 %v1189_v5, %v1076_v44  ;;  %v1397_v23 = vadd.f32 %v1360_v13, %v1188_v49 }
 0x2f3   : > { %v3242_v8 = vpop.f32.mrf.mxu1 }
 0x2f4   : > { %v1194_v59 = vadd.f32 %v3242_v8, %v1077_v53  ;;  %v1398_v17 = vadd.f32 %v1362_v21, %v1190_v57  ;;  %v1081_v21 = vmul.f32 %v2388_v15, %v3230_v62  ;;  %v1382_v53 = vpop.f32.mrf.mxu0 }
 0x2f5   : > { %v3246_v9 = vpop.f32.mrf.mxu1 }
 0x2f6   : > { %v1196_v5 = vadd.f32 %v3246_v9, %v1078_v54  ;;  %v1399_v42 = vadd.f32 %v3260_v24, %v1194_v59  ;;  %v1082_v9 = vmul.f32 %v2388_v15, %v3232_v63  ;;  %v1083_v24 = vmul.f32 %v2390_v38, %v3234_v0 }
 0x2f7   : > { %v3250_v14 = vpop.f32.mrf.mxu1 }
 0x2f8   : > { %v1198_v13 = vadd.f32 %v3250_v14, %v1079_v20  ;;  %v1400_v45 = vadd.f32 %v3264_v26, %v1196_v5 }
 0x2f9   : > { %v3252_v16 = vpop.f32.mrf.mxu1 }
 0x2fa   : > { %v1200_v14 = vadd.f32 %v3252_v16, %v1080_v30  ;;  %v1401_v63 = vadd.f32 %v3268_v33, %v1198_v13 }
 0x2fb   : > { %v3254_v18 = vpop.f32.mrf.mxu1 }
 0x2fc   : > { %v1204_v50 = vadd.f32 %v3254_v18, %v1081_v21  ;;  %v1402_v0 = vadd.f32 %v3274_v40, %v1200_v14 }
 0x2fd   : > { %v3256_v19 = vpop.f32.mrf.mxu1 }
 0x2fe   : > { %v1206_v11 = vadd.f32 %v3256_v19, %v1082_v9  ;;  %v1403_v40 = vadd.f32 %v3280_v55, %v1204_v50 }
 0x2ff   : > { %v3258_v22 = vpop.f32.mrf.mxu1 }
 0x300   : > { %v1404_v30 = vadd.f32 %v1378_v31, %v1206_v11 }
 0x301   : > { %v3262_v25 = vpop.f32.mrf.mxu1 }
 0x303   : > { %v3266_v27 = vpop.f32.mrf.mxu1 }
 0x305   : > { %v3270_v34 = vpop.f32.mrf.mxu1 }
 0x307   : > { %v3272_v37 = vpop.f32.mrf.mxu1 }
 0x309   : > { %v3276_v47 = vpop.f32.mrf.mxu1 }
 0x39a   : > { %v1545_v56 = vpop.f32.mrf.mxu1 }
 0x39b   : > { %v1584_v28 = vadd.f32 %v1545_v56, %v1395_v52  ;;  %v2392_v56 = vpop.eup %2391 }
 0x39c   : > { %v1547_v3 = vpop.f32.mrf.mxu1  ;;  %v2394_v20 = vpop.eup %2393  ;;  %v1085_v19 = vmul.f32 %v2392_v56, %v3238_v4 }
 0x39d   : > { %v1585_v58 = vadd.f32 %v1547_v3, %v1396_v1  ;;  %v1613_v39 = vadd.f32 %v3285_v29, %v1584_v28  ;;  %v1208_v1 = vadd.f32 %v3258_v22, %v1083_v24  ;;  %v1086_v28 = vmul.f32 %v2392_v56, %v3240_v7 }
 0x39e   : > { %v1549_v32 = vpop.f32.mrf.mxu1  ;;  %v1210_v22 = vadd.f32 %v3262_v25, %v1084_v51  ;;  %v1214_v7 = vadd.f32 %v3266_v27, %v1085_v19  ;;  %v1088_v31 = vmul.f32 %v2394_v20, %v3248_v10 }
 0x39f   : > { %v1614_v35 = vadd.f32 %v3282_v12, %v1585_v58  ;;  %v1586_v60 = vadd.f32 %v1549_v32, %v1397_v23  ;;  %v1386_v58 = vpop.f32.mrf.mxu0  ;;  %v1216_v38 = vadd.f32 %v3270_v34, %v1086_v28 }
 0x3a0   : > { %v1551_v36 = vpop.f32.mrf.mxu1  ;;  %v1406_v25 = vadd.f32 %v1382_v53, %v1210_v22  ;;  %v1407_v9 = vadd.f32 %v1386_v58, %v1214_v7  ;;  %v1220_v34 = vadd.f32 %v3276_v47, %v1088_v31 }
 0x3a1   : > { %v1669_v41 = vmax.f32 %v1614_v35, 0.0  ;;  %v1615_v8 = vadd.f32 %v3285_v29, %v1586_v60  ;;  %v1587_v61 = vadd.f32 %v1551_v36, %v1398_v17  ;;  %v1087_v17 = vmul.f32 %v2394_v20, %v3244_v6  ;;  %v1388_v13 = vpop.f32.mrf.mxu0 }
 0x3a2   : > { %v1555_v44 = vpop.f32.mrf.mxu1  ;;  %v1405_v35 = vadd.f32 %v1380_v43, %v1208_v1 }
 0x3a3   : > { %1677 = vst [vmem:[%s3301_s22] sm:$0xff] %v1669_v41  ;;  %v2069_v46 = vpack.c.bf16 %v1615_v8, %v1613_v39  ;;  %v1616_v48 = vadd.f32 %v3282_v12, %v1587_v61  ;;  %v1588_v26 = vadd.f32 %v1555_v44, %v1399_v42  ;;  %v1218_v41 = vadd.f32 %v3272_v37, %v1087_v17  ;;  %v1390_v8 = vpop.f32.mrf.mxu0 }
 0x3a4   : > { %v1557_v62 = vpop.f32.mrf.mxu1  ;;  %v1408_v44 = vadd.f32 %v1388_v13, %v1216_v38 }
 0x3a5   : > { %2070 = vst [vmem:[%s3309_s11] sm:$0xff] %v2069_v46   ;;  %v1670_v16 = vmax.f32 %v1616_v48, 0.0  ;;  %v1589_v49 = vadd.f32 %v1557_v62, %v1400_v45  ;;  %v1617_v18 = vadd.f32 %v3285_v29, %v1588_v26  ;;  %v1392_v37 = vpop.f32.mrf.mxu0  ;;  %v1409_v48 = vadd.f32 %v1390_v8, %v1218_v41 }
 0x3a6   : > { %v1559_v54 = vpop.f32.mrf.mxu1  ;;  %v1410_v26 = vadd.f32 %v1392_v37, %v1220_v34 }
 0x3a7   : > { %1678 = vst [vmem:[%s3301_s22 + $0x8] sm:$0xff] %v1670_v16  ;;  %v1618_v33 = vadd.f32 %v3282_v12, %v1589_v49  ;;  %v1590_v52 = vadd.f32 %v1559_v54, %v1401_v63 }
 0x3a8   : > { %v1561_v57 = vpop.f32.mrf.mxu1 }
 0x3a9   : > { %v1671_v3 = vmax.f32 %v1618_v33, 0.0  ;;  %v1619_v2 = vadd.f32 %v3285_v29, %v1590_v52  ;;  %v1591_v23 = vadd.f32 %v1561_v57, %v1402_v0 }
 0x3aa   : > { %v1565_v59 = vpop.f32.mrf.mxu1 }
 0x3ab   : > { %1679 = vst [vmem:[%s3301_s22 + $0x10] sm:$0xff] %v1671_v3  ;;  %v2074_v32 = vpack.c.bf16 %v1619_v2, %v1617_v18  ;;  %v1620_v15 = vadd.f32 %v3282_v12, %v1591_v23  ;;  %v1592_v60 = vadd.f32 %v1565_v59, %v1403_v40 }
 0x3ac   : > { %v1567_v5 = vpop.f32.mrf.mxu1 }
 0x3ad   : > { %2086 = vst [vmem:[%s3309_s11 + $0x8] sm:$0xff] %v2074_v32   ;;  %v1672_v55 = vmax.f32 %v1620_v15, 0.0  ;;  %v1593_v4 = vadd.f32 %v1567_v5, %v1404_v30  ;;  %v1621_v42 = vadd.f32 %v3285_v29, %v1592_v60 }
 0x3ae   : > { %v1569_v36 = vpop.f32.mrf.mxu1 }
 0x3af   : > { %1680 = vst [vmem:[%s3301_s22 + $0x18] sm:$0xff] %v1672_v55  ;;  %v1622_v39 = vadd.f32 %v3282_v12, %v1593_v4  ;;  %v1594_v6 = vadd.f32 %v1569_v36, %v1405_v35 }
 0x3b0   : > { %v1571_v61 = vpop.f32.mrf.mxu1 }
 0x3b1   : > { %v1673_v27 = vmax.f32 %v1622_v39, 0.0  ;;  %v1623_v21 = vadd.f32 %v3285_v29, %v1594_v6  ;;  %v1595_v10 = vadd.f32 %v1571_v61, %v1406_v25 }
 0x3b2   : > { %v1575_v43 = vpop.f32.mrf.mxu1 }
 0x3b3   : > { %1681 = vst [vmem:[%s3301_s22 + $0x20] sm:$0xff] %v1673_v27  ;;  %v2079_v45 = vpack.c.bf16 %v1623_v21, %v1621_v42  ;;  %v1624_v14 = vadd.f32 %v3282_v12, %v1595_v10  ;;  %v1596_v62 = vadd.f32 %v1575_v43, %v1407_v9 }
 0x3b4   : > { %v1577_v46 = vpop.f32.mrf.mxu1 }
 0x3b5   : > { %2087 = vst [vmem:[%s3309_s11 + $0x10] sm:$0xff] %v2079_v45   ;;  %v1674_v24 = vmax.f32 %v1624_v14, 0.0  ;;  %v1597_v63 = vadd.f32 %v1577_v46, %v1408_v44  ;;  %v1625_v51 = vadd.f32 %v3285_v29, %v1596_v62 }
 0x3b6   : > { %v1579_v16 = vpop.f32.mrf.mxu1 }
 0x3b7   : > { %1682 = vst [vmem:[%s3301_s22 + $0x28] sm:$0xff] %v1674_v24  ;;  %v1626_v47 = vadd.f32 %v3282_v12, %v1597_v63  ;;  %v1598_v49 = vadd.f32 %v1579_v16, %v1409_v48 }
 0x3b8   : > { %v1581_v50 = vpop.f32.mrf.mxu1 }
 0x3b9   : > { %v1675_v53 = vmax.f32 %v1626_v47, 0.0  ;;  %v1627_v54 = vadd.f32 %v3285_v29, %v1598_v49  ;;  %v1599_v56 = vadd.f32 %v1581_v50, %v1410_v26 }
 0x3bb   : > { %1683 = vst [vmem:[%s3301_s22 + $0x30] sm:$0xff] %v1675_v53  ;;  %v2084_v0 = vpack.c.bf16 %v1627_v54, %v1625_v51  ;;  %v1628_v11 = vadd.f32 %v3282_v12, %v1599_v56  ;;  %1697 = sbr.rel (!%p3497_p12) target bundleno = 987 (0x3db), region = 96 }
 0x3bd   : > { %2088 = vst [vmem:[%s3309_s11 + $0x18] sm:$0xff] %v2084_v0   ;;  %v1676_v33 = vmax.f32 %v1628_v11, 0.0 }
 0x3bf   : > { %1684 = vst [vmem:[%s3301_s22 + $0x38] sm:$0xff] %v1676_v33 }
 0x3c0   : > { %s3513_s3 = smov (!%p1700_p3, %s1699_s3), 8 }
 0x3c1   : > { %s3354_s18 = sshll.u32 %s3513_s3, 6 }
 0x3c2   : > { %s1704_s28 = ssub.s32 512, %s3354_s18 }
 0x3c3   : > { %1705 = vsyncadd %s1686_s30, %s1704_s28  ;;  %p2042_p6 = scmp.ne.s32.totalorder %s3354_s18, 0  ;;  %s2064_s19 = sshll.u32 %s2845_s17, 9 }
 0x3c4   : > { %s3364_s29 = scalar_lea.hbm %s3464_s9, %s2064_s19  ;;  %s1710_s26 = sshll.u32 %s3309_s11, 4  ;;  %s3367_s26 = int_to_ptr.vmem [resolvable:$true] %s1710_s26 }
 0x3c5   : > { %s2629_s12 = scalar_lea.vmem %s3367_s26, %s3354_s18  ;;  %s2763_s24 = smov [#allocation17]  }
 0x3c6   : > { %p2630_p4 = scmp.ne.s32.totalorder %s3367_s26, %s2629_s12  ;;  %s2633_s2 = sshll.u32 %s2763_s24, 4  ;;  %s2634_s2 = int_to_ptr.vmem [resolvable:$false] %s2633_s2 }
 0x3c7   : > { %s2635_s20 = scalar_lea.vmem %s2634_s2, 1024  ;;  %p2636_p13 = scmp.lt.s32.totalorder %s3367_s26, %s2634_s2 }
 0x3c8   : > { %p2631_p2 = pnand %p2630_p4, %p2042_p6  ;;  %p2637_p5 = scmp.lt.s32.totalorder %s2635_s20, %s2629_s12 }
 0x3ca   : > { %p2632_p7 = pneg %p2631_p2  ;;  %p2638_p9 = por %p2637_p5, %p2636_p13 }
 0x3cc   : > { %p2639_p8 = pnand %p2638_p9, %p2632_p7 }
 0x3ce   : > { %2642 = shalt.err (!%p2639_p8)
}
 0x3cf   : > { %s2643_s11 = scalar_lea.hbm %s3364_s29, %s3354_s18  ;;  %s2647_s19 = scalar_lea.hbm %s3464_s9, 768 }
 0x3d0   : > { %p2644_p11 = scmp.ne.s32.totalorder %s3364_s29, %s2643_s11  ;;  %p2648_p1 = scmp.lt.s32.totalorder %s3364_s29, %s3464_s9 }
 0x3d1   : > { %p2649_p12 = scmp.lt.s32.totalorder %s2647_s19, %s2643_s11 }
 0x3d2   : > { %p2645_p10 = pnand %p2644_p11, %p2042_p6 }
 0x3d3   : > { %p2650_p3 = por %p2649_p12, %p2648_p1 }
 0x3d4   : > { %p2646_p0 = pneg %p2645_p10 }
 0x3d6   : > { %p2651_p4 = pnand %p2650_p3, %p2646_p0 }
 0x3d8   : > { %2654 = shalt.err (!%p2651_p4)
}
 0x3d9   : > { %s2764_s12 = smov 64   ;;  %s2765_s24 = smov 4  }
 0x3da   : > { %1716 = dma.vmem_to_hbm [thread:$0]  (%p2042_p6), %s3367_s26, %s3354_s18, %s3364_s29, %s1686_s30, %s2764_s12, %s2764_s12, %s2765_s24  }
 0x3db PF: > { %p3498_p2 = scmp.ne.s32.totalorder %s3480_s25, 0 }
 0x3dc   : > { %s2046_s2 = sshll.u32 (%p3498_p2), %s2845_s17, 3 }
 0x3dd   : > { %1719 = sbr.rel (!%p3498_p2) target bundleno = 1021 (0x3fd), region = 100  ;;  %s1721_s20 = ssub.s32 (%p3498_p2), 12, %s2046_s2 }
 0x3de   : > { %p1722_p7 = scmp.lt.s32.totalorder (%p3498_p2), %s1721_s20, 8 }
 0x3e2   : > { %s3515_s20 = smov (!%p1722_p7, %s1721_s20), 8 }
 0x3e3   : > { %s3397_s11 = sshll.u32 %s3515_s20, 7 }
 0x3e4   : > { %s1726_s3 = ssub.s32 1024, %s3397_s11 }
 0x3e5   : > { %1727 = vsyncadd %s1691_s23, %s1726_s3  ;;  %p2048_p6 = scmp.ne.s32.totalorder %s3397_s11, 0  ;;  %s2065_s25 = sshll.u32 %s2845_s17, 10 }
 0x3e6   : > { %s3407_s29 = scalar_lea.hbm %s3465_s10, %s2065_s25  ;;  %s1732_s26 = sshll.u32 %s3301_s22, 4  ;;  %s3410_s26 = int_to_ptr.vmem [resolvable:$true] %s1732_s26 }
 0x3e7   : > { %s2655_s28 = scalar_lea.vmem %s3410_s26, %s3397_s11  ;;  %s2766_s19 = smov [#allocation18]  }
 0x3e8   : > { %p2656_p13 = scmp.ne.s32.totalorder %s3410_s26, %s2655_s28  ;;  %s2659_s13 = sshll.u32 %s2766_s19, 4  ;;  %s2660_s13 = int_to_ptr.vmem [resolvable:$false] %s2659_s13 }
 0x3e9   : > { %s2661_s17 = scalar_lea.vmem %s2660_s13, 2048  ;;  %p2662_p8 = scmp.lt.s32.totalorder %s3410_s26, %s2660_s13 }
 0x3ea   : > { %p2657_p5 = pnand %p2656_p13, %p2048_p6  ;;  %p2663_p11 = scmp.lt.s32.totalorder %s2661_s17, %s2655_s28 }
 0x3ec   : > { %p2658_p9 = pneg %p2657_p5  ;;  %p2664_p10 = por %p2663_p11, %p2662_p8 }
 0x3ee   : > { %p2665_p0 = pnand %p2664_p10, %p2658_p9 }
 0x3f0   : > { %2668 = shalt.err (!%p2665_p0)
}
 0x3f1   : > { %s2669_s22 = scalar_lea.hbm %s3407_s29, %s3397_s11  ;;  %s2673_s24 = scalar_lea.hbm %s3465_s10, 1536 }
 0x3f2   : > { %p2670_p1 = scmp.ne.s32.totalorder %s3407_s29, %s2669_s22  ;;  %p2674_p4 = scmp.lt.s32.totalorder %s3407_s29, %s3465_s10 }
 0x3f3   : > { %p2675_p2 = scmp.lt.s32.totalorder %s2673_s24, %s2669_s22 }
 0x3f4   : > { %p2671_p12 = pnand %p2670_p1, %p2048_p6 }
 0x3f5   : > { %p2676_p7 = por %p2675_p2, %p2674_p4 }
 0x3f6   : > { %p2672_p3 = pneg %p2671_p12 }
 0x3f8   : > { %p2677_p13 = pnand %p2676_p7, %p2672_p3 }
 0x3fa   : > { %2680 = shalt.err (!%p2677_p13)
}
 0x3fb   : > { %s2767_s3 = smov 128   ;;  %s2768_s25 = smov 8  }
 0x3fc   : > { %1738 = dma.vmem_to_hbm [thread:$0]  (%p2048_p6), %s3410_s26, %s3397_s11, %s3407_s29, %s1691_s23, %s2767_s3, %s2767_s3, %s2768_s25  }
 0x3fd PF: > { %s3499_s30 = sld [smem:[#allocation28_spill]]  ;;  %p3502_p9 = scmp.ge.s32.totalorder %s2743_s16, 2 }
 0x3fe   : > { %s3500_s18 = sld [smem:[#allocation31_spill]] }
 0x403   : > { %s1747_s28 = sand.u32 1, %s3499_s30  }
 0x404   : > { %p3501_p5 = scmp.ne.s32.totalorder %s3500_s18, 0  ;;  %s1748_s19 = scalar_lea.sflag [#allocation4], %s1747_s28 }
 0x406   : > { %p2202_p8 = pnand %p3502_p9, %p3501_p5 }
 0x408   : > { %p2203_p11 = pneg %p2202_p8 }
 0x40a   : > { %2722 = dma.done.wait (%p2203_p11), %s1748_s19, 512  }
 0x40b   : > { %2724 = vsyncadd (%p2203_p11), %s1748_s19, 4294966784  ;;  %s1757_s13 = scalar_lea.sflag [#allocation19], %s1747_s28 }
 0x40c   : > { %2726 = dma.done.wait (%p2203_p11), %s1757_s13, 1024  }
 0x40d   : > { %2728 = vsyncadd (%p2203_p11), %s1757_s13, 4294966272  ;;  %s3503_s16 = sld [smem:[#allocation29_spill]]  ;;  %s3505_s13 = smov %s2735_s14 }
 0x40e   : > { %s3504_s21 = sld [smem:[#allocation30_spill]]  ;;  %s3506_s14 = smov %s2739_s15 }
 0x413   : > { %p33_p6 = scmp.ge.s32.totalorder %s3503_s16, 4  }
 0x414   : > { %s3507_s15 = smov %s3504_s21 }
 0x415   :  { %35 = sbr.rel (!%p33_p6) target bundleno = 15 (0xf), region = 160 }
 0x41a   :  { %1762 = vsyncpa [#allocation3], 1 }
 0x41b   :  { %1764 = vsyncpa [#allocation3 + $0x1], 1 }
 0x41c   :  { %1765 = vsyncpa [#allocation6], 1 }
 0x41d   :  { %1767 = vsyncpa [#allocation6 + $0x1], 1 }
 0x41e   :  { %1768 = vsyncpa [#allocation9], 1 }
 0x41f   :  { %1769 = vsyncpa [#allocation12], 1 }
 0x420   :  { %1770 = vsyncpa [#allocation15], 1 }
 0x421   :  { %1771 = vsyncpa [#allocation4], 1 }
 0x422   :  { %1773 = vsyncpa [#allocation4 + $0x1], 1 }
 0x423   :  { %1774 = vsyncpa [#allocation19], 1 }
 0x424   :  { %1776 = vsyncpa [#allocation19 + $0x1], 1 }

</bundles_post_ra>
